<compile_context>
chip_gen: v7x
topology: tpu7x:2x2x1
jax: 0.10.0
libtpu: 0.0.40
codegen_flags: <defaults>
</compile_context>

<pallas_src>
import jax
import jax.numpy as jnp
from jax.experimental import pallas as pl
from jax.experimental.pallas import tpu as pltpu

# Full-f32 matmul accuracy everywhere (reference einsums AND kernel dots) so the verification
# tolerance is meaningful; a production bf16 pipeline is unaffected by this flag.
jax.config.update("jax_default_matmul_precision", "highest")


def _vmem_limit_bytes():
    # Per-generation scoped-VMEM limit: ~100 MiB on 128-MiB parts (v5e/v6e), ~56 MiB on v7x.
    try:
        cap = int(pltpu.get_tpu_info().vmem_capacity_bytes)
    except Exception:
        cap = 64 * 1024 * 1024
    return min(100 * 1024 * 1024, cap - 8 * 1024 * 1024)


def _pick_tq(S, H):
    # Query-row tile over S: large enough to amortize per-step overhead (v5e/v6e), small enough
    # that the (TQ,S) f32 score slabs + per-tile f32 intermediates fit v7x's 64 MiB VMEM.
    cap = 512 if H <= 512 else 256
    if S <= cap:
        return S
    for cand in (cap, 256, 128, 64, 32, 16, 8):
        if cand <= cap and S % cand == 0:
            return cand
    return S


# ----------------------------------------------------------------------------
# Single fused kernel: grid = (batch, query-row tile)
# ----------------------------------------------------------------------------
def _bert_flow_kernel(inv_t_ref, q_ref, key_ref, val_ref, res_ref,
                      wkT_ref, bk_ref, wqT_ref, bq_ref, wvT_ref,
                      o_ref, kf_sc):
    # q/res/o blocks: (1, TQ, H);  key/val blocks: (2, 1, S, H) (full sequence, one batch elem)
    # weights resident: wkT/wqT/wvT (H, H) as (in, out); biases (1, H)
    # kf_sc: VMEM scratch (2, S, H) holding key_fusion(key) for the current batch element.
    r = pl.program_id(1)
    TQ = q_ref.shape[1]
    S = val_ref.shape[2]
    H = val_ref.shape[3]
    act_dtype = val_ref.dtype

    inv_t0 = inv_t_ref[0]   # 1/50.00  (vb flow pass)
    inv_t1 = inv_t_ref[1]   # 1/49.95  (va flow pass)
    inv_t2 = inv_t_ref[2]   # 1/49.90  (2-way fusion pass)

    # --- key_fusion, once per batch element (row tile 0), cached in VMEM scratch ------------
    @pl.when(r == 0)
    def _():
        k2s = key_ref[...].reshape(2 * S, H)                       # both streams, one MXU pass
        kf = (jnp.dot(k2s, wkT_ref[...], preferred_element_type=jnp.float32)
              + bk_ref[...].astype(jnp.float32))
        kf_sc[...] = kf.reshape(2, S, H).astype(kf_sc.dtype)

    row0 = pl.multiple_of(r * TQ, TQ)

    kf0 = kf_sc[0]                                  # (S, H) fused keys, stream 0
    kf1 = kf_sc[1]
    v0 = val_ref[0, 0]                              # (S, H) full value streams (flow "values")
    v1 = val_ref[1, 0]

    v0t = val_ref[0, 0, pl.ds(row0, TQ), :]         # this tile's rows (flow queries/residuals)
    v1t = val_ref[1, 0, pl.ds(row0, TQ), :]
    kf0t = kf_sc[0, pl.ds(row0, TQ), :]
    kf1t = kf_sc[1, pl.ds(row0, TQ), :]

    # --- flow attention: softmax(q @ k^T / T) @ v + residual ---------------------------------
    def flow(q_rows, k_full, v_full, r_rows, inv_t):
        # contraction over last dims avoids transposing k through the XLU
        s = jax.lax.dot_general(q_rows, k_full, (((1,), (1,)), ((), ())),
                                preferred_element_type=jnp.float32) * inv_t
        s = s - jnp.max(s, axis=-1, keepdims=True)
        p = jnp.exp(s)
        p = p / jnp.sum(p, axis=-1, keepdims=True)                 # exact divide (correctness)
        ctx = jnp.dot(p.astype(act_dtype), v_full, preferred_element_type=jnp.float32)
        return ctx + r_rows.astype(jnp.float32)

    vb = flow(v1t, kf0, v0, v1t, inv_t0)            # value_b_out rows of this tile  (f32)
    va = flow(v0t, kf1, v1, v0t, inv_t1)            # value_a_out rows of this tile  (f32)

    # --- query_fusion -------------------------------------------------------------------------
    qf = (jnp.dot(q_ref[0], wqT_ref[...], preferred_element_type=jnp.float32)
          + bq_ref[...].astype(jnp.float32))                       # (TQ, H)

    # --- 2-way fusion softmax over the two streams (per token) -------------------------------
    sa = jnp.sum(qf * kf0t.astype(jnp.float32), axis=-1, keepdims=True) * inv_t2
    sb = jnp.sum(qf * kf1t.astype(jnp.float32), axis=-1, keepdims=True) * inv_t2
    m = jnp.maximum(sa, sb)
    ea = jnp.exp(sa - m)
    eb = jnp.exp(sb - m)
    den = ea + eb
    pa = ea / den                                                   # exact divides
    pb = eb / den

    # value_fusion is linear and bias-free: mix the raw streams first, then ONE matmul.
    vmix = pa * va + pb * vb                                        # (TQ, H) f32
    out = (jnp.dot(vmix.astype(act_dtype), wvT_ref[...], preferred_element_type=jnp.float32)
           + res_ref[0].astype(jnp.float32))
    o_ref[0] = out.astype(o_ref.dtype)


def bert_flow_forward(params_t, query, key, value, residual, temperature=True):
    """query/residual: (B, S, H); key/value: (2, B, S, H). Returns (B, S, H)."""
    B, S, H = query.shape
    act_dtype = query.dtype

    t0 = 50.0 if temperature else 1.0
    red = t0 / 1000.0
    t1 = max(t0 - red, 1.0)
    t2 = max(t1 - red, 1.0)
    # precomputed INVERSE temperatures -> no in-kernel scalar divide, no recompile per T
    inv_t = jnp.array([1.0 / t0, 1.0 / t1, 1.0 / t2], dtype=jnp.float32)

    # weights in the activation dtype once (bf16 MXU path on bf16 pipelines; no-op for f32)
    wkT = params_t["wkT"].astype(act_dtype)
    wqT = params_t["wqT"].astype(act_dtype)
    wvT = params_t["wvT"].astype(act_dtype)
    bk = params_t["bk"].astype(jnp.float32).reshape(1, H)
    bq = params_t["bq"].astype(jnp.float32).reshape(1, H)

    TQ = _pick_tq(S, H)
    grid = (B, S // TQ)

    tok = pl.BlockSpec((1, TQ, H), lambda b, r: (b, r, 0))
    pair = pl.BlockSpec((2, 1, S, H), lambda b, r: (0, b, 0, 0))    # same block across r -> no re-DMA
    w_spec = pl.BlockSpec((H, H), lambda b, r: (0, 0))
    b_spec = pl.BlockSpec((1, H), lambda b, r: (0, 0))

    return pl.pallas_call(
        _bert_flow_kernel,
        grid=grid,
        in_specs=[
            pl.BlockSpec(memory_space=pltpu.MemorySpace.SMEM),      # inverse temperatures
            tok,                                                    # query
            pair,                                                   # key   (both streams)
            pair,                                                   # value (both streams)
            tok,                                                    # residual
            w_spec, b_spec,                                         # key_fusion
            w_spec, b_spec,                                         # query_fusion
            w_spec,                                                 # value_fusion (no bias)
        ],
        out_specs=tok,
        out_shape=jax.ShapeDtypeStruct((B, S, H), act_dtype),
        scratch_shapes=[pltpu.VMEM((2, S, H), act_dtype)],          # cached key_fusion output
        compiler_params=pltpu.CompilerParams(
            dimension_semantics=("parallel", "arbitrary"),
            vmem_limit_bytes=_vmem_limit_bytes(),
        ),
    )(inv_t, query, key, value, residual, wkT, bk, wqT, bq, wvT)


# ----------------------------------------------------------------------------
# Pure-JAX reference for verification
# ----------------------------------------------------------------------------
def bert_flow_reference(params, query, key, value, residual, temperature=True):
    T = 50.0 if temperature else 1.0
    red = T / 1000.0

    def lin(x, w, b):
        y = x @ w.T
        return y if b is None else y + b

    def flow(q, k, v, r, t):
        s = jnp.einsum("bqd,bkd->bqk", q, k) / t
        p = jax.nn.softmax(s, axis=-1)
        return jnp.einsum("bqk,bkd->bqd", p, v) + r

    key_f = lin(key, params["wk"], params["bk"])
    vb = flow(value[1], key_f[0], value[0], value[1], T)
    T = max(T - red, 1.0)
    va = flow(value[0], key_f[1], value[1], value[0], T)
    T = max(T - red, 1.0)
    vstk = jnp.stack([va, vb], 0)
    q_f = lin(query, params["wq"], params["bq"])
    v_f = lin(vstk, params["wv"], None)
    keys = jnp.stack([key_f[0], key_f[1]], axis=-2)   # (B, S, 2, H)
    vals = jnp.stack([v_f[0], v_f[1]], axis=-2)       # (B, S, 2, H)
    s = jnp.einsum("bsh,bskh->bsk", q_f, keys) / T
    p = jax.nn.softmax(s, axis=-1)
    out = jnp.einsum("bsk,bskh->bsh", p, vals) + residual
    return out


# ----------------------------------------------------------------------------
if __name__ == "__main__":
    B, S, H = 2, 8, 32
    dtype = jnp.float32

    root = jax.random.PRNGKey(0)
    kq, kk, k1, k2, k3, k4 = jax.random.split(root, 6)

    # PyTorch-style (out, in) weights with deterministic BERT init.
    wq = (jax.random.normal(kq, (H, H)) * 0.02).astype(dtype)
    wk = (jax.random.normal(kk, (H, H)) * 0.02).astype(dtype)
    # value_fusion with value_initialized=True: zeros + 1e-6, diagonal filled with 1.0
    wv = jnp.full((H, H), 1e-6, dtype).at[jnp.arange(H), jnp.arange(H)].set(1.0)
    bq = jnp.zeros((H,), dtype)
    bk = jnp.zeros((H,), dtype)

    # Pre-transpose once (store as (in, out)) -- no per-call .T in the forward.
    params_t = {"wqT": wq.T, "bq": bq[None, :], "wkT": wk.T, "bk": bk[None, :], "wvT": wv.T}
    params_ref = {"wq": wq, "bq": bq, "wk": wk, "bk": bk, "wv": wv}

    query = jax.random.normal(k1, (B, S, H), dtype)
    key = jax.random.normal(k2, (2, B, S, H), dtype)
    value = jax.random.normal(k3, (2, B, S, H), dtype)
    residual = jax.random.normal(k4, (B, S, H), dtype)

    fwd = jax.jit(bert_flow_forward)
    out = jax.block_until_ready(fwd(params_t, query, key, value, residual))

    ref = bert_flow_reference(params_ref, query, key, value, residual)
    assert out.shape == (B, S, H)
    assert jnp.allclose(out, ref, atol=2e-3, rtol=2e-3), "mismatch vs reference"

    print("KERNEL_OK")
</pallas_src>

<mosaic_0001>
module attributes {stable_mosaic.version = 11 : i64} {
  func.func @_bert_flow_kernel(%arg0: i32, %arg1: i32, %arg2: memref<3xf32, #tpu.memory_space<smem>>, %arg3: memref<1x8x32xf32, #tpu.memory_space<vmem>>, %arg4: memref<2x1x8x32xf32, #tpu.memory_space<vmem>>, %arg5: memref<2x1x8x32xf32, #tpu.memory_space<vmem>>, %arg6: memref<1x8x32xf32, #tpu.memory_space<vmem>>, %arg7: memref<32x32xf32, #tpu.memory_space<vmem>>, %arg8: memref<1x32xf32, #tpu.memory_space<vmem>>, %arg9: memref<32x32xf32, #tpu.memory_space<vmem>>, %arg10: memref<1x32xf32, #tpu.memory_space<vmem>>, %arg11: memref<32x32xf32, #tpu.memory_space<vmem>>, %arg12: memref<1x8x32xf32, #tpu.memory_space<vmem>>, %arg13: memref<2x8x32xf32, #tpu.memory_space<vmem>>) attributes {dimension_semantics = [#tpu.dimension_semantics<parallel>, #tpu.dimension_semantics<arbitrary>], iteration_bounds = array<i64: 2, 1>, scalar_prefetch = 0 : i64, scratch_operands = 1 : i64, tpu.core_type = #tpu.core_type<tc>, window_params = [{transform_indices = @transform_0, window_bounds = array<i64: 3>}, {transform_indices = @transform_1, window_bounds = array<i64: 1, 8, 32>}, {transform_indices = @transform_2, window_bounds = array<i64: 2, 1, 8, 32>}, {transform_indices = @transform_3, window_bounds = array<i64: 2, 1, 8, 32>}, {transform_indices = @transform_4, window_bounds = array<i64: 1, 8, 32>}, {pipeline_mode = #tpu.pipeline_mode<synchronous>, transform_indices = @transform_5, window_bounds = array<i64: 32, 32>}, {pipeline_mode = #tpu.pipeline_mode<synchronous>, transform_indices = @transform_6, window_bounds = array<i64: 1, 32>}, {pipeline_mode = #tpu.pipeline_mode<synchronous>, transform_indices = @transform_7, window_bounds = array<i64: 32, 32>}, {pipeline_mode = #tpu.pipeline_mode<synchronous>, transform_indices = @transform_8, window_bounds = array<i64: 1, 32>}, {pipeline_mode = #tpu.pipeline_mode<synchronous>, transform_indices = @transform_9, window_bounds = array<i64: 32, 32>}, {transform_indices = @transform_10, window_bounds = array<i64: 1, 8, 32>}]} {
    %c0 = arith.constant 0 : index
    %0 = memref.load %arg2[%c0] : memref<3xf32, #tpu.memory_space<smem>>
    %c1 = arith.constant 1 : index
    %1 = memref.load %arg2[%c1] : memref<3xf32, #tpu.memory_space<smem>>
    %c2 = arith.constant 2 : index
    %2 = memref.load %arg2[%c2] : memref<3xf32, #tpu.memory_space<smem>>
    %c0_i32 = arith.constant 0 : i32
    %3 = arith.cmpi eq, %arg1, %c0_i32 : i32
    %4 = arith.extui %3 : i1 to i32
    %c0_i32_0 = arith.constant 0 : i32
    %5 = arith.cmpi ne, %4, %c0_i32_0 : i32
    scf.if %5 {
      %c0_51 = arith.constant 0 : index
      %c0_52 = arith.constant 0 : index
      %c0_53 = arith.constant 0 : index
      %c0_54 = arith.constant 0 : index
      %94 = vector.load %arg4[%c0_51, %c0_52, %c0_53, %c0_54] : memref<2x1x8x32xf32, #tpu.memory_space<vmem>>, vector<2x1x8x32xf32>
      %95 = vector.shape_cast %94 : vector<2x1x8x32xf32> to vector<16x32xf32>
      %c0_55 = arith.constant 0 : index
      %c0_56 = arith.constant 0 : index
      %96 = vector.load %arg7[%c0_55, %c0_56] : memref<32x32xf32, #tpu.memory_space<vmem>>, vector<32x32xf32>
      %cst_57 = arith.constant dense<0.000000e+00> : vector<16x32xf32>
      %97 = tpu.matmul %95, %96, %cst_57 {dimension_numbers = #tpu.dot_dimension_numbers<[1], [0], [0], [1], [0, 0, 1, 1], [], []>, precision = #tpu.contract_precision<fp32>} : vector<16x32xf32>, vector<32x32xf32>, vector<16x32xf32> -> vector<16x32xf32>
      %c0_58 = arith.constant 0 : index
      %c0_59 = arith.constant 0 : index
      %98 = vector.load %arg8[%c0_58, %c0_59] : memref<1x32xf32, #tpu.memory_space<vmem>>, vector<1x32xf32>
      %99 = vector.broadcast %98 : vector<1x32xf32> to vector<16x32xf32>
      %100 = arith.addf %97, %99 : vector<16x32xf32>
      %101 = vector.shape_cast %100 : vector<16x32xf32> to vector<2x8x32xf32>
      %c0_60 = arith.constant 0 : index
      %c0_61 = arith.constant 0 : index
      %c0_62 = arith.constant 0 : index
      %102 = vector.load %arg13[%c0_60, %c0_61, %c0_62] : memref<2x8x32xf32, #tpu.memory_space<vmem>>, vector<2x8x32xf32>
      tpu.vector_store %arg13[%c0_60, %c0_61, %c0_62], %101 {strides = array<i32>} : memref<2x8x32xf32, #tpu.memory_space<vmem>>, vector<2x8x32xf32>,
    } else {
    }
    %c8_i32 = arith.constant 8 : i32
    %6 = arith.muli %arg1, %c8_i32 : i32
    %7 = tpu.assume_multiple %6, 8 : i32
    %c0_1 = arith.constant 0 : index
    %c0_2 = arith.constant 0 : index
    %c0_3 = arith.constant 0 : index
    %8 = vector.load %arg13[%c0_1, %c0_2, %c0_3] : memref<2x8x32xf32, #tpu.memory_space<vmem>>, vector<1x8x32xf32>
    %9 = vector.shape_cast %8 : vector<1x8x32xf32> to vector<8x32xf32>
    %c1_4 = arith.constant 1 : index
    %c0_5 = arith.constant 0 : index
    %c0_6 = arith.constant 0 : index
    %10 = vector.load %arg13[%c1_4, %c0_5, %c0_6] : memref<2x8x32xf32, #tpu.memory_space<vmem>>, vector<1x8x32xf32>
    %11 = vector.shape_cast %10 : vector<1x8x32xf32> to vector<8x32xf32>
    %c0_7 = arith.constant 0 : index
    %c0_8 = arith.constant 0 : index
    %c0_9 = arith.constant 0 : index
    %c0_10 = arith.constant 0 : index
    %12 = vector.load %arg5[%c0_7, %c0_8, %c0_9, %c0_10] : memref<2x1x8x32xf32, #tpu.memory_space<vmem>>, vector<1x1x8x32xf32>
    %13 = vector.shape_cast %12 : vector<1x1x8x32xf32> to vector<8x32xf32>
    %c1_11 = arith.constant 1 : index
    %c0_12 = arith.constant 0 : index
    %c0_13 = arith.constant 0 : index
    %c0_14 = arith.constant 0 : index
    %14 = vector.load %arg5[%c1_11, %c0_12, %c0_13, %c0_14] : memref<2x1x8x32xf32, #tpu.memory_space<vmem>>, vector<1x1x8x32xf32>
    %15 = vector.shape_cast %14 : vector<1x1x8x32xf32> to vector<8x32xf32>
    %c0_15 = arith.constant 0 : index
    %c0_16 = arith.constant 0 : index
    %16 = arith.index_cast %7 : i32 to index
    %c0_17 = arith.constant 0 : index
    %17 = vector.load %arg5[%c0_15, %c0_16, %16, %c0_17] : memref<2x1x8x32xf32, #tpu.memory_space<vmem>>, vector<1x1x8x32xf32>
    %18 = vector.shape_cast %17 : vector<1x1x8x32xf32> to vector<8x32xf32>
    %c1_18 = arith.constant 1 : index
    %c0_19 = arith.constant 0 : index
    %19 = arith.index_cast %7 : i32 to index
    %c0_20 = arith.constant 0 : index
    %20 = vector.load %arg5[%c1_18, %c0_19, %19, %c0_20] : memref<2x1x8x32xf32, #tpu.memory_space<vmem>>, vector<1x1x8x32xf32>
    %21 = vector.shape_cast %20 : vector<1x1x8x32xf32> to vector<8x32xf32>
    %c0_21 = arith.constant 0 : index
    %22 = arith.index_cast %7 : i32 to index
    %c0_22 = arith.constant 0 : index
    %23 = vector.load %arg13[%c0_21, %22, %c0_22] : memref<2x8x32xf32, #tpu.memory_space<vmem>>, vector<1x8x32xf32>
    %24 = vector.shape_cast %23 : vector<1x8x32xf32> to vector<8x32xf32>
    %c1_23 = arith.constant 1 : index
    %25 = arith.index_cast %7 : i32 to index
    %c0_24 = arith.constant 0 : index
    %26 = vector.load %arg13[%c1_23, %25, %c0_24] : memref<2x8x32xf32, #tpu.memory_space<vmem>>, vector<1x8x32xf32>
    %27 = vector.shape_cast %26 : vector<1x8x32xf32> to vector<8x32xf32>
    %cst = arith.constant dense<0.000000e+00> : vector<8x8xf32>
    %28 = tpu.matmul %21, %9, %cst {dimension_numbers = #tpu.dot_dimension_numbers<[1], [1], [0], [0], [0, 0, 1, 0], [], []>, precision = #tpu.contract_precision<fp32>} : vector<8x32xf32>, vector<8x32xf32>, vector<8x8xf32> -> vector<8x8xf32>
    %29 = vector.broadcast %0 : f32 to vector<8x8xf32>
    %30 = arith.mulf %28, %29 : vector<8x8xf32>
    %cst_25 = arith.constant dense<0xFF800000> : vector<8xf32>
    %31 = vector.multi_reduction <maximumf>, %30, %cst_25 [1] : vector<8x8xf32> to vector<8xf32>
    %32 = vector.shape_cast %31 : vector<8xf32> to vector<8x1xf32>
    %33 = vector.broadcast %32 : vector<8x1xf32> to vector<8x8xf32>
    %34 = arith.subf %30, %33 : vector<8x8xf32>
    %35 = math.exp %34 : vector<8x8xf32>
    %cst_26 = arith.constant dense<0.000000e+00> : vector<8xf32>
    %36 = vector.multi_reduction <add>, %35, %cst_26 [1] : vector<8x8xf32> to vector<8xf32>
    %37 = vector.shape_cast %36 : vector<8xf32> to vector<8x1xf32>
    %38 = vector.broadcast %37 : vector<8x1xf32> to vector<8x8xf32>
    %39 = arith.divf %35, %38 : vector<8x8xf32>
    %cst_27 = arith.constant dense<0.000000e+00> : vector<8x32xf32>
    %40 = tpu.matmul %39, %13, %cst_27 {dimension_numbers = #tpu.dot_dimension_numbers<[1], [0], [0], [1], [0, 0, 1, 1], [], []>, precision = #tpu.contract_precision<fp32>} : vector<8x8xf32>, vector<8x32xf32>, vector<8x32xf32> -> vector<8x32xf32>
    %41 = arith.addf %40, %21 : vector<8x32xf32>
    %cst_28 = arith.constant dense<0.000000e+00> : vector<8x8xf32>
    %42 = tpu.matmul %18, %11, %cst_28 {dimension_numbers = #tpu.dot_dimension_numbers<[1], [1], [0], [0], [0, 0, 1, 0], [], []>, precision = #tpu.contract_precision<fp32>} : vector<8x32xf32>, vector<8x32xf32>, vector<8x8xf32> -> vector<8x8xf32>
    %43 = vector.broadcast %1 : f32 to vector<8x8xf32>
    %44 = arith.mulf %42, %43 : vector<8x8xf32>
    %cst_29 = arith.constant dense<0xFF800000> : vector<8xf32>
    %45 = vector.multi_reduction <maximumf>, %44, %cst_29 [1] : vector<8x8xf32> to vector<8xf32>
    %46 = vector.shape_cast %45 : vector<8xf32> to vector<8x1xf32>
    %47 = vector.broadcast %46 : vector<8x1xf32> to vector<8x8xf32>
    %48 = arith.subf %44, %47 : vector<8x8xf32>
    %49 = math.exp %48 : vector<8x8xf32>
    %cst_30 = arith.constant dense<0.000000e+00> : vector<8xf32>
    %50 = vector.multi_reduction <add>, %49, %cst_30 [1] : vector<8x8xf32> to vector<8xf32>
    %51 = vector.shape_cast %50 : vector<8xf32> to vector<8x1xf32>
    %52 = vector.broadcast %51 : vector<8x1xf32> to vector<8x8xf32>
    %53 = arith.divf %49, %52 : vector<8x8xf32>
    %cst_31 = arith.constant dense<0.000000e+00> : vector<8x32xf32>
    %54 = tpu.matmul %53, %15, %cst_31 {dimension_numbers = #tpu.dot_dimension_numbers<[1], [0], [0], [1], [0, 0, 1, 1], [], []>, precision = #tpu.contract_precision<fp32>} : vector<8x8xf32>, vector<8x32xf32>, vector<8x32xf32> -> vector<8x32xf32>
    %55 = arith.addf %54, %18 : vector<8x32xf32>
    %c0_32 = arith.constant 0 : index
    %c0_33 = arith.constant 0 : index
    %c0_34 = arith.constant 0 : index
    %56 = vector.load %arg3[%c0_32, %c0_33, %c0_34] : memref<1x8x32xf32, #tpu.memory_space<vmem>>, vector<1x8x32xf32>
    %57 = vector.shape_cast %56 : vector<1x8x32xf32> to vector<8x32xf32>
    %c0_35 = arith.constant 0 : index
    %c0_36 = arith.constant 0 : index
    %58 = vector.load %arg9[%c0_35, %c0_36] : memref<32x32xf32, #tpu.memory_space<vmem>>, vector<32x32xf32>
    %cst_37 = arith.constant dense<0.000000e+00> : vector<8x32xf32>
    %59 = tpu.matmul %57, %58, %cst_37 {dimension_numbers = #tpu.dot_dimension_numbers<[1], [0], [0], [1], [0, 0, 1, 1], [], []>, precision = #tpu.contract_precision<fp32>} : vector<8x32xf32>, vector<32x32xf32>, vector<8x32xf32> -> vector<8x32xf32>
    %c0_38 = arith.constant 0 : index
    %c0_39 = arith.constant 0 : index
    %60 = vector.load %arg10[%c0_38, %c0_39] : memref<1x32xf32, #tpu.memory_space<vmem>>, vector<1x32xf32>
    %61 = vector.broadcast %60 : vector<1x32xf32> to vector<8x32xf32>
    %62 = arith.addf %59, %61 : vector<8x32xf32>
    %63 = arith.mulf %62, %24 : vector<8x32xf32>
    %cst_40 = arith.constant dense<0.000000e+00> : vector<8xf32>
    %64 = vector.multi_reduction <add>, %63, %cst_40 [1] : vector<8x32xf32> to vector<8xf32>
    %65 = vector.shape_cast %64 : vector<8xf32> to vector<8x1xf32>
    %66 = vector.broadcast %2 : f32 to vector<8x1xf32>
    %67 = arith.mulf %65, %66 : vector<8x1xf32>
    %68 = arith.mulf %62, %27 : vector<8x32xf32>
    %cst_41 = arith.constant dense<0.000000e+00> : vector<8xf32>
    %69 = vector.multi_reduction <add>, %68, %cst_41 [1] : vector<8x32xf32> to vector<8xf32>
    %70 = vector.shape_cast %69 : vector<8xf32> to vector<8x1xf32>
    %71 = vector.broadcast %2 : f32 to vector<8x1xf32>
    %72 = arith.mulf %70, %71 : vector<8x1xf32>
    %73 = arith.maximumf %67, %72 : vector<8x1xf32>
    %74 = arith.subf %67, %73 : vector<8x1xf32>
    %75 = math.exp %74 : vector<8x1xf32>
    %76 = arith.subf %72, %73 : vector<8x1xf32>
    %77 = math.exp %76 : vector<8x1xf32>
    %78 = arith.addf %75, %77 : vector<8x1xf32>
    %79 = arith.divf %75, %78 : vector<8x1xf32>
    %80 = arith.divf %77, %78 : vector<8x1xf32>
    %81 = vector.broadcast %79 : vector<8x1xf32> to vector<8x32xf32>
    %82 = arith.mulf %81, %55 : vector<8x32xf32>
    %83 = vector.broadcast %80 : vector<8x1xf32> to vector<8x32xf32>
    %84 = arith.mulf %83, %41 : vector<8x32xf32>
    %85 = arith.addf %82, %84 : vector<8x32xf32>
    %c0_42 = arith.constant 0 : index
    %c0_43 = arith.constant 0 : index
    %86 = vector.load %arg11[%c0_42, %c0_43] : memref<32x32xf32, #tpu.memory_space<vmem>>, vector<32x32xf32>
    %cst_44 = arith.constant dense<0.000000e+00> : vector<8x32xf32>
    %87 = tpu.matmul %85, %86, %cst_44 {dimension_numbers = #tpu.dot_dimension_numbers<[1], [0], [0], [1], [0, 0, 1, 1], [], []>, precision = #tpu.contract_precision<fp32>} : vector<8x32xf32>, vector<32x32xf32>, vector<8x32xf32> -> vector<8x32xf32>
    %c0_45 = arith.constant 0 : index
    %c0_46 = arith.constant 0 : index
    %c0_47 = arith.constant 0 : index
    %88 = vector.load %arg6[%c0_45, %c0_46, %c0_47] : memref<1x8x32xf32, #tpu.memory_space<vmem>>, vector<1x8x32xf32>
    %89 = vector.shape_cast %88 : vector<1x8x32xf32> to vector<8x32xf32>
    %90 = arith.addf %87, %89 : vector<8x32xf32>
    %c0_48 = arith.constant 0 : index
    %c0_49 = arith.constant 0 : index
    %c0_50 = arith.constant 0 : index
    %91 = vector.load %arg12[%c0_48, %c0_49, %c0_50] : memref<1x8x32xf32, #tpu.memory_space<vmem>>, vector<1x8x32xf32>
    %92 = vector.shape_cast %91 : vector<1x8x32xf32> to vector<8x32xf32>
    %93 = vector.shape_cast %90 : vector<8x32xf32> to vector<1x8x32xf32>
    tpu.vector_store %arg12[%c0_48, %c0_49, %c0_50], %93 {strides = array<i32>} : memref<1x8x32xf32, #tpu.memory_space<vmem>>, vector<1x8x32xf32>,
    return
  }
  func.func @transform_0(%arg0: i32, %arg1: i32) -> i32 {
    %c0_i32 = arith.constant 0 : i32
    %c0_i32_0 = arith.constant 0 : i32
    return %c0_i32 : i32
  }
  func.func @transform_1(%arg0: i32, %arg1: i32) -> (i32, i32, i32) {
    %c0_i32 = arith.constant 0 : i32
    %c0_i32_0 = arith.constant 0 : i32
    return %arg0, %arg1, %c0_i32 : i32, i32, i32
  }
  func.func @transform_2(%arg0: i32, %arg1: i32) -> (i32, i32, i32, i32) {
    %c0_i32 = arith.constant 0 : i32
    %c0_i32_0 = arith.constant 0 : i32
    %c0_i32_1 = arith.constant 0 : i32
    %c0_i32_2 = arith.constant 0 : i32
    return %c0_i32, %arg0, %c0_i32_0, %c0_i32_1 : i32, i32, i32, i32
  }
  func.func @transform_3(%arg0: i32, %arg1: i32) -> (i32, i32, i32, i32) {
    %c0_i32 = arith.constant 0 : i32
    %c0_i32_0 = arith.constant 0 : i32
    %c0_i32_1 = arith.constant 0 : i32
    %c0_i32_2 = arith.constant 0 : i32
    return %c0_i32, %arg0, %c0_i32_0, %c0_i32_1 : i32, i32, i32, i32
  }
  func.func @transform_4(%arg0: i32, %arg1: i32) -> (i32, i32, i32) {
    %c0_i32 = arith.constant 0 : i32
    %c0_i32_0 = arith.constant 0 : i32
    return %arg0, %arg1, %c0_i32 : i32, i32, i32
  }
  func.func @transform_5(%arg0: i32, %arg1: i32) -> (i32, i32) {
    %c0_i32 = arith.constant 0 : i32
    %c0_i32_0 = arith.constant 0 : i32
    %c0_i32_1 = arith.constant 0 : i32
    return %c0_i32, %c0_i32_0 : i32, i32
  }
  func.func @transform_6(%arg0: i32, %arg1: i32) -> (i32, i32) {
    %c0_i32 = arith.constant 0 : i32
    %c0_i32_0 = arith.constant 0 : i32
    %c0_i32_1 = arith.constant 0 : i32
    return %c0_i32, %c0_i32_0 : i32, i32
  }
  func.func @transform_7(%arg0: i32, %arg1: i32) -> (i32, i32) {
    %c0_i32 = arith.constant 0 : i32
    %c0_i32_0 = arith.constant 0 : i32
    %c0_i32_1 = arith.constant 0 : i32
    return %c0_i32, %c0_i32_0 : i32, i32
  }
  func.func @transform_8(%arg0: i32, %arg1: i32) -> (i32, i32) {
    %c0_i32 = arith.constant 0 : i32
    %c0_i32_0 = arith.constant 0 : i32
    %c0_i32_1 = arith.constant 0 : i32
    return %c0_i32, %c0_i32_0 : i32, i32
  }
  func.func @transform_9(%arg0: i32, %arg1: i32) -> (i32, i32) {
    %c0_i32 = arith.constant 0 : i32
    %c0_i32_0 = arith.constant 0 : i32
    %c0_i32_1 = arith.constant 0 : i32
    return %c0_i32, %c0_i32_0 : i32, i32
  }
  func.func @transform_10(%arg0: i32, %arg1: i32) -> (i32, i32, i32) {
    %c0_i32 = arith.constant 0 : i32
    %c0_i32_0 = arith.constant 0 : i32
    return %arg0, %arg1, %c0_i32 : i32, i32, i32
  }
}

</mosaic_0001>

<bundles_post_ra>
// kernel: bert_flow_forward.1
= control target key start
LH: loop header
LB: loop body
LE: loop exit
PB: predicated region body
PF: predicated region fallthrough
CT: control target
= control target key end

     0   :  { %s6087_s0 = inlined_call_operand.vmem [shape: f32[3], index: 0, kind: input, shape index: {}]   ;;  %s6088_s1 = inlined_call_operand.vmem [shape: f32[2,8,32], index: 1, kind: input, shape index: {}]   ;;  %s6089_s2 = inlined_call_operand.hbm [shape: f32[2,2,8,32], index: 2, kind: input, shape index: {}]   ;;  %s6090_s3 = inlined_call_operand.hbm [shape: f32[2,2,8,32], index: 3, kind: input, shape index: {}]   ;;  %s6091_s4 = inlined_call_operand.hbm [shape: f32[2,8,32], index: 4, kind: input, shape index: {}]   ;;  %s6092_s5 = inlined_call_operand.hbm [shape: f32[32,32], index: 5, kind: input, shape index: {}]   ;;  %s6093_s6 = inlined_call_operand.hbm [shape: f32[1,32], index: 6, kind: input, shape index: {}]   ;;  %s6094_s7 = inlined_call_operand.hbm [shape: f32[32,32], index: 7, kind: input, shape index: {}]   ;;  %s6095_s8 = inlined_call_operand.vmem [shape: f32[1,32], index: 8, kind: input, shape index: {}]   ;;  %s6096_s9 = inlined_call_operand.hbm [shape: f32[32,32], index: 9, kind: input, shape index: {}]   ;;  %s6097_s10 = inlined_call_operand.hbm [shape: f32[2,8,32], index: 10, kind: output, shape index: {}]  }
   0x1   :  { %6126 = sst [smem:[#allocation32_spill]] %s6087_s0 }
   0x2   :  { %6127 = sst [smem:[#allocation33_spill]] %s6088_s1 }
   0x3   :  { %6128 = sst [smem:[#allocation34_spill]] %s6090_s3 }
   0x4   :  { %6129 = sst [smem:[#allocation35_spill]] %s6092_s5 }
   0x5   :  { %6130 = sst [smem:[#allocation36_spill]] %s6094_s7 }
   0x6   :  { %6131 = sst [smem:[#allocation37_spill]] %s6095_s8 }
   0x7   :  { %6132 = sst [smem:[#allocation38_spill]] %s6097_s10 }
   0x8   :  { %15 = vsyncpa [#allocation6], 0 }
   0x9   :  { %16 = vsyncpa [#allocation4], 0 }
   0xa   :  { %18 = vsyncpa [#allocation4 + $0x1], 0 }
   0xb   :  { %19 = vsyncpa [#allocation9], 0 }
   0xc   :  { %21 = vsyncpa [#allocation9 + $0x1], 0 }
   0xd   :  { %22 = vsyncpa [#allocation12], 0 }
   0xe   :  { %23 = vsyncpa [#allocation15], 0 }
   0xf   :  { %24 = vsyncpa [#allocation5], 0 }
  0x10   :  { %26 = vsyncpa [#allocation5 + $0x1], 0  ;;  %s5425_s13 = smov 0   ;;  %s5427_s14 = smov 0  }
  0x11   :  { %s5429_s15 = smov 0   ;;  %s5431_s16 = smov 0  }
  0x12   :  { %s5433_s17 = smov 0   ;;  %s5435_s18 = smov 0  }
  0x13 LB: > { %6133 = sst [smem:[#allocation24_spill]] %s5333_s13  ;;  %s5456_s19 = sadd.s32 4294967295, %s5353_s18   ;;  %s5353_s18 = sphi %s5435_s18, %s32_s18   ;;  %s5349_s17 = sphi %s5433_s17, %s6185_s17   ;;  %s5345_s16 = sphi %s5431_s16, %s6184_s16   ;;  %s5341_s15 = sphi %s5429_s15, %s6183_s15   ;;  %s5337_s14 = sphi %s5427_s14, %s6187_s14   ;;  %s5333_s13 = sphi %s5425_s13, %s6186_s13  }
  0x14   : > { %6134 = sst [smem:[#allocation25_spill]] %s5341_s15  ;;  %s4201_s20 = sadd.s32 4294967294, %s5353_s18  }
  0x15   : > { %6135 = sst [smem:[#allocation26_spill]] %s5349_s17  ;;  %p113_p0 = scmp.ne.s32.totalorder %s5337_s14, %s5333_s13 }
  0x16   : > { %6136 = sst [smem:[#allocation27_spill]] %s5353_s18  ;;  %p6099_p1 = scmp.eq.s32.totalorder %s5456_s19, 0 }
  0x17   : > { %p304_p3 = scmp.eq.s32.totalorder %s4201_s20, 1  ;;  %p4202_p5 = scmp.ge.s32.totalorder %s5353_s18, 1 }
  0x18   : > { %p5465_p4 = por %p6099_p1, %p113_p0  ;;  %p311_p7 = scmp.lt.s32.totalorder %s5353_s18, 3 }
  0x19   : > { %p5470_p6 = por %p304_p3, %p113_p0  ;;  %s5355_s24 = smov [#allocation11]  }
  0x1a   : > { %s6137_s21 = scalar_select %p5465_p4, 1, 0 }
  0x1b   : > { %s6138_s22 = scalar_select %p5470_p6, 1, 0 }
  0x1c   : > { %p5475_p8 = pnand %p4202_p5, %p311_p7  ;;  %s334_s25 = sshll.u32 %s5355_s24, 4  ;;  %s5479_s25 = int_to_ptr.vmem [resolvable:$true] %s334_s25 }
  0x1d   : > { %6139 = sst [smem:[#allocation28_spill]] %s6138_s22  ;;  %s5356_s27 = smov [#allocation14]  }
  0x1e   : > { %s6140_s23 = scalar_select %p5475_p8, 1, 0 }
  0x1f   : > { %p4923_p9 = pneg %p5475_p8  ;;  %s358_s28 = sshll.u32 %s5356_s27, 4  ;;  %s5490_s28 = int_to_ptr.vmem [resolvable:$true] %s358_s28 }
  0x20   : > { %s6142_s5 = sld [smem:[#allocation35_spill]] }
  0x21   : > { %p5486_p11 = pnand %p4923_p9, %p6099_p1 }
  0x23   : > { %s6141_s26 = scalar_select %p5486_p11, 1, 0 }
  0x24   : > { %p5500_p13 = pneg %p5486_p11 }
  0x26   : > { %s5038_s11 = scalar_lea.hbm %s6142_s5, 512 }
  0x27   : > { %p5039_p12 = scmp.ne.s32.totalorder %s6142_s5, %s5038_s11  ;;  %p5045_p5 = scmp.lt.u32.totalorder %s5038_s11, %s6142_s5 }
  0x28   : > { %s6143_s24 = scalar_select %p5500_p13, 1, 0 }
  0x29   : > { %p5041_p0 = pnand %p5500_p13, %p5039_p12 }
  0x2b   : > { %p5042_p3 = pneg %p5041_p0 }
  0x2d   : > { %p5047_p7 = pnand %p5045_p5, %p5042_p3 }
  0x2f   : > { %5050 = shalt.err (!%p5047_p7)
}
  0x30   : > { %s5051_s29 = scalar_lea.vmem %s5479_s25, 512  ;;  %p5059_p2 = scmp.lt.s32.totalorder %s5479_s25, %s5479_s25 }
  0x31   : > { %p5052_p9 = scmp.ne.s32.totalorder %s5479_s25, %s5051_s29  ;;  %p5060_p6 = scmp.lt.s32.totalorder %s5051_s29, %s5051_s29 }
  0x33   : > { %p5054_p10 = pnand %p5052_p9, %p5500_p13  ;;  %p5061_p12 = por %p5060_p6, %p5059_p2 }
  0x35   : > { %p5055_p1 = pneg %p5054_p10 }
  0x37   : > { %p5062_p0 = pnand %p5061_p12, %p5055_p1 }
  0x39   : > { %5065 = shalt.err (!%p5062_p0)
}
  0x3a   : > { %s6102_s30 = smov 128   ;;  %s6104_s22 = smov 8  }
  0x3b   : > { %4929 = dma.hbm_to_vmem [thread:$0]  (!%p5486_p11), %s6142_s5, 512, %s5479_s25, [#allocation12], %s6102_s30, %s6102_s30, %s6104_s22  }
  0x3c   : > { %s6144_s7 = sld [smem:[#allocation36_spill]] }
  0x42   : > { %s5066_s29 = scalar_lea.hbm %s6144_s7, 512 }
  0x43   : > { %p5067_p1 = scmp.ne.s32.totalorder %s6144_s7, %s5066_s29  ;;  %p5073_p10 = scmp.lt.u32.totalorder %s5066_s29, %s6144_s7 }
  0x45   : > { %p5069_p2 = pnand %p5067_p1, %p5500_p13 }
  0x47   : > { %p5070_p6 = pneg %p5069_p2 }
  0x49   : > { %p5075_p3 = pnand %p5073_p10, %p5070_p6 }
  0x4b   : > { %5078 = shalt.err (!%p5075_p3)
}
  0x4c   : > { %s5079_s25 = scalar_lea.vmem %s5490_s28, 512  ;;  %p5087_p12 = scmp.lt.s32.totalorder %s5490_s28, %s5490_s28 }
  0x4d   : > { %p5080_p5 = scmp.ne.s32.totalorder %s5490_s28, %s5079_s25  ;;  %p5088_p0 = scmp.lt.s32.totalorder %s5079_s25, %s5079_s25 }
  0x4f   : > { %p5082_p7 = pnand %p5080_p5, %p5500_p13  ;;  %p5089_p1 = por %p5088_p0, %p5087_p12 }
  0x51   : > { %p5083_p9 = pneg %p5082_p7 }
  0x53   : > { %p5090_p2 = pnand %p5089_p1, %p5083_p9 }
  0x55   : > { %5093 = shalt.err (!%p5090_p2)
}
  0x56   : > { %4935 = dma.hbm_to_vmem [thread:$0]  (!%p5486_p11), %s6144_s7, 512, %s5490_s28, [#allocation15], %s6102_s30, %s6102_s30, %s6104_s22  }
  0x57   : > { %s44_s10 = sadd.s32 1, %s5349_s17  ;;  %s100_s13 = sadd.s32 1, %s5341_s15 }
  0x58   : > { %p46_p6 = scmp.ge.s32.totalorder %s44_s10, 2  ;;  %p107_p10 = scmp.ne.s32.totalorder %s5341_s15, %s5337_s14 }
  0x59   : > { %p108_p3 = scmp.eq.s32.totalorder %s5353_s18, 0  ;;  %p4958_p5 = scmp.lt.s32.totalorder %s5353_s18, 2 }
  0x5a   : > { %s6189_s10 = smov (%p46_p6, %s44_s10), 0  ;;  %p6146_p9 = scmp.eq.s32.totalorder %s5456_s19, 1 }
  0x5b   : > { %6145 = sst [smem:[#allocation29_spill]] %s6189_s10  ;;  %p109_p7 = por %p108_p3, %p107_p10 }
  0x5c   : > { %p5560_p12 = por %p6146_p9, %p107_p10  ;;  %s97_s12 = ssub.s32 %s5349_s17, %s6189_s10 }
  0x5d   : > { %s5567_s20 = sand.u32 1, %s5341_s15   ;;  %p98_p0 = scmp.eq.s32.totalorder %s97_s12, 0 }
  0x5e   : > { %s6147_s11 = scalar_select %p5560_p12, 1, 0 }
  0x5f   : > { %s6107_s28 = sshll.u32 %s5567_s20, 4  ;;  %s5571_s27 = sshll.u32 %s5349_s17, 7 }
  0x60   : > { %6148 = sst [smem:[#allocation30_spill]] %s6147_s11  ;;  %p5573_p1 = pnand %p4958_p5, %p109_p7 }
  0x61   : > { %s5578_s25 = scalar_select %p98_p0, %s5341_s15, %s100_s13  }
  0x62   : > { %s6149_s29 = scalar_select %p5573_p1, 1, 0 }
  0x63   : > { %6150 = sst [smem:[#allocation31_spill]] %s5578_s25  ;;  %s418_s1 = sand.u32 1, %s5353_s18  }
  0x64   : > { %s6151_s3 = sld [smem:[#allocation34_spill]]  ;;  %s422_s12 = scalar_lea.vmem [#allocation8], %s6107_s28 }
  0x65   : > { %s428_s5 = sshll.u32 %s422_s12, 4  ;;  %s5591_s7 = scalar_lea.sflag [#allocation9], %s418_s1  ;;  %s5589_s5 = int_to_ptr.vmem [resolvable:$true] %s428_s5 }
  0x66   : > { %p5597_p6 = pneg %p5573_p1 }
  0x68   : > { %s6152_s13 = scalar_select %p5597_p6, 1, 0 }
  0x6a   : > { %s5585_s22 = scalar_lea.hbm %s6151_s3, %s5571_s27  ;;  %s5099_s28 = scalar_lea.hbm %s6151_s3, 512 }
  0x6b   : > { %s5094_s10 = scalar_lea.hbm %s5585_s22, 256  ;;  %p5100_p5 = scmp.lt.u32.totalorder %s5585_s22, %s6151_s3 }
  0x6c   : > { %p5095_p2 = scmp.ne.s32.totalorder %s5585_s22, %s5094_s10  ;;  %p5101_p7 = scmp.lt.u32.totalorder %s5099_s28, %s5094_s10 }
  0x6d   : > { %p5103_p0 = scmp.lt.u32.totalorder %s5094_s10, %s5585_s22 }
  0x6e   : > { %p5097_p10 = pnand %p5597_p6, %p5095_p2  ;;  %p5102_p9 = por %p5101_p7, %p5100_p5 }
  0x70   : > { %p5098_p3 = pneg %p5097_p10  ;;  %p5104_p12 = por %p5103_p0, %p5102_p9 }
  0x72   : > { %p5105_p4 = pnand %p5104_p12, %p5098_p3 }
  0x74   : > { %5108 = shalt.err (!%p5105_p4)
}
  0x75   : > { %s5109_s1 = scalar_lea.vmem %s5589_s5, 256  ;;  %s5359_s30 = smov [#allocation8]  }
  0x76   : > { %p5110_p2 = scmp.ne.s32.totalorder %s5589_s5, %s5109_s1  ;;  %s5114_s8 = sshll.u32 %s5359_s30, 4  ;;  %s5115_s8 = int_to_ptr.vmem [resolvable:$false] %s5114_s8 }
  0x77   : > { %s5116_s17 = scalar_lea.vmem %s5115_s8, 512  ;;  %p5117_p11 = scmp.lt.s32.totalorder %s5589_s5, %s5115_s8 }
  0x78   : > { %p5112_p10 = pnand %p5110_p2, %p5597_p6  ;;  %p5118_p13 = scmp.lt.s32.totalorder %s5116_s17, %s5109_s1 }
  0x7a   : > { %p5113_p8 = pneg %p5112_p10  ;;  %p5119_p5 = por %p5118_p13, %p5117_p11 }
  0x7c   : > { %p5120_p7 = pnand %p5119_p5, %p5113_p8 }
  0x7e   : > { %5123 = shalt.err (!%p5120_p7)
}
  0x7f   : > { %s6116_s10 = smov 256   ;;  %s6153_s28 = smov 8  }
  0x80   : > { %s6154_s12 = smov 128   ;;  %s6155_s0 = sld [smem:[#allocation32_spill]] }
  0x81   : > { %4945 = dma.hbm_to_vmem [thread:$0]  (!%p5573_p1), %s5585_s22, 256, %s5589_s5, %s5591_s7, %s6116_s10, %s6154_s12, %s6153_s28  }
  0x82   : > { %p6156_p8 = scmp.ne.s32.totalorder %s6143_s24, 0 }
  0x86   : > { %s324_s25 = sshll.u32 %s6155_s0, 4  ;;  %s325_s25 = int_to_ptr.vmem [resolvable:$true] %s324_s25 }
  0x87   : > { %s5124_s1 = scalar_lea.vmem %s325_s25, 16  ;;  %p5132_p12 = scmp.lt.s32.totalorder %s325_s25, %s325_s25 }
  0x88   : > { %p5125_p4 = scmp.ne.s32.totalorder %s325_s25, %s5124_s1  ;;  %p5133_p3 = scmp.lt.s32.totalorder %s5124_s1, %s5124_s1 }
  0x8a   : > { %p5127_p11 = pnand %p5125_p4, %p6156_p8  ;;  %p5134_p9 = por %p5133_p3, %p5132_p12 }
  0x8c   : > { %p5128_p13 = pneg %p5127_p11 }
  0x8e   : > { %p5135_p0 = pnand %p5134_p9, %p5128_p13 }
  0x90   : > { %5138 = shalt.err (!%p5135_p0)
}
  0x91   : > { %s5361_s8 = smov [#allocation3]   ;;  %p6157_p2 = scmp.ne.s32.totalorder %s6141_s26, 0 }
  0x92   : > { %s5362_s5 = smov [#allocation13]   ;;  %s5363_s3 = smov [#allocation16]  }
  0x93   : > { %4926 = dma.vmem_to_smem (!%p6157_p2), %s325_s25, 16, %s5361_s8, [#allocation6]  }
  0x94   : > { %s348_s22 = sshll.u32 %s5362_s5, 4  ;;  %s374_s17 = sshll.u32 %s5363_s3, 4  ;;  %s349_s22 = int_to_ptr.vmem [resolvable:$true] %s348_s22  ;;  %s375_s17 = int_to_ptr.vmem [resolvable:$true] %s374_s17 }
  0x95   : > { %s5139_s0 = scalar_lea.hbm %s6093_s6, 16 }
  0x96   : > { %p5140_p10 = scmp.ne.s32.totalorder %s6093_s6, %s5139_s0  ;;  %p5146_p4 = scmp.lt.u32.totalorder %s5139_s0, %s6093_s6 }
  0x98   : > { %p5142_p5 = pnand %p5140_p10, %p6156_p8 }
  0x9a   : > { %p5143_p7 = pneg %p5142_p5 }
  0x9c   : > { %p5148_p11 = pnand %p5146_p4, %p5143_p7 }
  0x9e   : > { %5151 = shalt.err (!%p5148_p11)
}
  0x9f   : > { %s5152_s25 = scalar_lea.vmem %s349_s22, 16  ;;  %s5159_s10 = scalar_lea.vmem %s349_s22, 32 }
  0xa0   : > { %p5153_p13 = scmp.ne.s32.totalorder %s349_s22, %s5152_s25  ;;  %p5160_p9 = scmp.lt.s32.totalorder %s349_s22, %s349_s22 }
  0xa1   : > { %p5161_p0 = scmp.lt.s32.totalorder %s5159_s10, %s5152_s25 }
  0xa2   : > { %p5155_p12 = pnand %p5153_p13, %p6156_p8 }
  0xa3   : > { %p5162_p1 = por %p5161_p0, %p5160_p9 }
  0xa4   : > { %p5156_p3 = pneg %p5155_p12 }
  0xa6   : > { %p5163_p6 = pnand %p5162_p1, %p5156_p3 }
  0xa8   : > { %5166 = shalt.err (!%p5163_p6)
}
  0xa9   : > { %4932 = dma.hbm_to_vmem [thread:$0]  (!%p6157_p2), %s6093_s6, 16, %s349_s22, [#allocation12]  }
  0xaa   : > { %s5167_s8 = scalar_lea.hbm %s6096_s9, 512 }
  0xab   : > { %p5168_p10 = scmp.ne.s32.totalorder %s6096_s9, %s5167_s8  ;;  %p5174_p6 = scmp.lt.u32.totalorder %s5167_s8, %s6096_s9 }
  0xad   : > { %p5170_p5 = pnand %p5168_p10, %p6156_p8 }
  0xaf   : > { %p5171_p1 = pneg %p5170_p5 }
  0xb1   : > { %p5176_p7 = pnand %p5174_p6, %p5171_p1 }
  0xb3   : > { %5179 = shalt.err (!%p5176_p7)
}
  0xb4   : > { %s5180_s25 = scalar_lea.vmem %s375_s17, 512  ;;  %p5188_p12 = scmp.lt.s32.totalorder %s375_s17, %s375_s17 }
  0xb5   : > { %p5181_p4 = scmp.ne.s32.totalorder %s375_s17, %s5180_s25  ;;  %p5189_p3 = scmp.lt.s32.totalorder %s5180_s25, %s5180_s25 }
  0xb7   : > { %p5183_p11 = pnand %p5181_p4, %p6156_p8  ;;  %p5190_p9 = por %p5189_p3, %p5188_p12 }
  0xb9   : > { %p5184_p13 = pneg %p5183_p11 }
  0xbb   : > { %p5191_p0 = pnand %p5190_p9, %p5184_p13 }
  0xbd   : > { %5194 = shalt.err (!%p5191_p0)
}
  0xbe   : > { %4938 = dma.hbm_to_vmem [thread:$0]  (!%p6157_p2), %s6096_s9, 512, %s375_s17, [#allocation15], %s6154_s12, %s6154_s12, %s6153_s28  }
  0xbf   : > { %s5674_s18 = scalar_lea.hbm %s6089_s2, %s5571_s27  ;;  %s6158_s0 = sshll.u32 %s5567_s20, 4 }
  0xc0   : > { %s402_s26 = scalar_lea.vmem [#allocation7], %s6158_s0  ;;  %s4213_s8 = sshll.u32 %s5567_s20, 3 }
  0xc1   : > { %s408_s11 = sshll.u32 %s402_s26, 4  ;;  %s399_s5 = scalar_lea.sflag [#allocation4], %s5567_s20  ;;  %s5679_s11 = int_to_ptr.vmem [resolvable:$true] %s408_s11 }
  0xc2   : > { %s5195_s3 = scalar_lea.hbm %s5674_s18, 256  ;;  %p6159_p10 = scmp.ne.s32.totalorder %s6152_s13, 0 }
  0xc3   : > { %p5196_p8 = scmp.ne.s32.totalorder %s5674_s18, %s5195_s3  ;;  %s5200_s1 = scalar_lea.hbm %s6089_s2, 512 }
  0xc4   : > { %p5201_p1 = scmp.lt.u32.totalorder %s5674_s18, %s6089_s2  ;;  %p5202_p6 = scmp.lt.u32.totalorder %s5200_s1, %s5195_s3 }
  0xc5   : > { %p5198_p2 = pnand %p5196_p8, %p6159_p10  ;;  %p5204_p4 = scmp.lt.u32.totalorder %s5195_s3, %s5674_s18 }
  0xc6   : > { %p5203_p7 = por %p5202_p6, %p5201_p1 }
  0xc7   : > { %p5199_p5 = pneg %p5198_p2 }
  0xc8   : > { %p5205_p11 = por %p5204_p4, %p5203_p7 }
  0xca   : > { %p5206_p13 = pnand %p5205_p11, %p5199_p5 }
  0xcc   : > { %5209 = shalt.err (!%p5206_p13)
}
  0xcd   : > { %s5210_s10 = scalar_lea.vmem %s5679_s11, 256  ;;  %s5364_s24 = smov [#allocation7]  }
  0xce   : > { %p5211_p12 = scmp.ne.s32.totalorder %s5679_s11, %s5210_s10  ;;  %s5215_s15 = sshll.u32 %s5364_s24, 4  ;;  %s5216_s15 = int_to_ptr.vmem [resolvable:$false] %s5215_s15 }
  0xcf   : > { %s5217_s0 = scalar_lea.vmem %s5216_s15, 512  ;;  %p5218_p0 = scmp.lt.s32.totalorder %s5679_s11, %s5216_s15 }
  0xd0   : > { %p5213_p3 = pnand %p5211_p12, %p6159_p10  ;;  %p5219_p8 = scmp.lt.s32.totalorder %s5217_s0, %s5210_s10 }
  0xd2   : > { %p5214_p9 = pneg %p5213_p3  ;;  %p5220_p2 = por %p5219_p8, %p5218_p0 }
  0xd4   : > { %p5221_p1 = pnand %p5220_p2, %p5214_p9 }
  0xd6   : > { %5224 = shalt.err (!%p5221_p1)
}
  0xd7   : > { %p6160_p5 = scmp.ne.s32.totalorder %s6149_s29, 0  ;;  %s6161_s26 = smov 256  }
  0xd8   : > { %s5712_s30 = scalar_lea.hbm %s6091_s4, %s5571_s27  ;;  %s442_s1 = scalar_lea.vmem [#allocation10], %s4213_s8 }
  0xd9   : > { %4942 = dma.hbm_to_vmem [thread:$0]  (!%p6160_p5), %s5674_s18, 256, %s5679_s11, %s399_s5, %s6161_s26, %s6154_s12, %s6153_s28  }
  0xda   : > { %s450_s25 = sshll.u32 %s442_s1, 4  ;;  %s5225_s22 = scalar_lea.hbm %s5712_s30, 128  ;;  %s451_s25 = int_to_ptr.vmem [resolvable:$true] %s450_s25 }
  0xdb   : > { %p5226_p6 = scmp.ne.s32.totalorder %s5712_s30, %s5225_s22  ;;  %s5230_s12 = scalar_lea.hbm %s6091_s4, 256 }
  0xdc   : > { %p5231_p11 = scmp.lt.u32.totalorder %s5712_s30, %s6091_s4  ;;  %p5232_p13 = scmp.lt.u32.totalorder %s5230_s12, %s5225_s22 }
  0xdd   : > { %p5228_p7 = pnand %p5226_p6, %p6159_p10  ;;  %p5234_p3 = scmp.lt.u32.totalorder %s5225_s22, %s5712_s30 }
  0xde   : > { %p5233_p12 = por %p5232_p13, %p5231_p11 }
  0xdf   : > { %p5229_p4 = pneg %p5228_p7 }
  0xe0   : > { %p5235_p9 = por %p5234_p3, %p5233_p12 }
  0xe2   : > { %p5236_p0 = pnand %p5235_p9, %p5229_p4 }
  0xe4   : > { %5239 = shalt.err (!%p5236_p0)
}
  0xe5   : > { %s5240_s20 = scalar_lea.vmem %s451_s25, 128  ;;  %s5365_s11 = smov [#allocation10]  }
  0xe6   : > { %p5241_p8 = scmp.ne.s32.totalorder %s451_s25, %s5240_s20  ;;  %s5245_s8 = sshll.u32 %s5365_s11, 4  ;;  %s5246_s8 = int_to_ptr.vmem [resolvable:$false] %s5245_s8 }
  0xe7   : > { %s5247_s5 = scalar_lea.vmem %s5246_s8, 256  ;;  %p5248_p6 = scmp.lt.s32.totalorder %s451_s25, %s5246_s8 }
  0xe8   : > { %p5243_p2 = pnand %p5241_p8, %p6159_p10  ;;  %p5249_p7 = scmp.lt.s32.totalorder %s5247_s5, %s5240_s20 }
  0xea   : > { %p5244_p1 = pneg %p5243_p2  ;;  %p5250_p5 = por %p5249_p7, %p5248_p6 }
  0xec   : > { %p5251_p11 = pnand %p5250_p5, %p5244_p1 }
  0xee   : > { %5254 = shalt.err (!%p5251_p11)
}
  0xef   : > { %p6162_p13 = scmp.ne.s32.totalorder %s6149_s29, 0  ;;  %p6163_p4 = scmp.ne.s32.totalorder %s6140_s23, 0 }
  0xf0   : > { %p6164_p10 = scmp.eq.s32.totalorder (!%p6163_p4), %s5456_s19, 0 }
  0xf1   : > { %4948 = dma.hbm_to_vmem [thread:$0]  (!%p6162_p13), %s5712_s30, 128, %s451_s25, %s5591_s7  }
  0xf2   : > { %459 = sbr.rel (%p6163_p4) target bundleno = 1709 (0x6ad), region = 60 }
  0xf9   : > { %5308 = dma.done.wait (%p6164_p10), [#allocation6], 16   ;;  %p6165_p12 = pmov %p6164_p10 }
  0xfa   : > { %s5741_s13 = sand.u32 1, %s5337_s14   ;;  %p6166_p5 = scmp.ne.s32.totalorder %s6137_s21, 0 }
  0xfb   : > { %5310 = vsyncadd (%p6165_p12), [#allocation6], 4294967280  ;;  %s4217_s24 = sshll.u32 %s5741_s13, 4  ;;  %s466_s29 = scalar_lea.sflag [#allocation4], %s5741_s13 }
  0xfc   : > { %s469_s15 = scalar_lea.vmem [#allocation7], %s4217_s24 }
  0xfd   : > { %5312 = dma.done.wait (%p6166_p5), %s466_s29, 256  }
  0xfe   : > { %5314 = vsyncadd (%p6166_p5), %s466_s29, 4294967040  ;;  %s474_s7 = sand.u32 1, %s5456_s19   ;;  %s5750_s0 = scalar_lea.vmem [#allocation8], %s4217_s24 }
  0xff   : > { %s475_s23 = scalar_lea.sflag [#allocation9], %s474_s7 }
 0x100   : > { %5316 = dma.done.wait (%p6166_p5), %s475_s23, 384  }
 0x101   : > { %5318 = vsyncadd (%p6166_p5), %s475_s23, 4294966912  ;;  %s4219_s26 = sshll.u32 %s5741_s13, 3  ;;  %p6167_p3 = pmov %p6164_p10 }
 0x102   : > { %s5759_s3 = scalar_lea.vmem [#allocation10], %s4219_s26 }
 0x103   : > { %5320 = dma.done.wait (%p6167_p3), [#allocation12], 528   ;;  %p6168_p9 = pmov %p6167_p3 }
 0x104   : > { %p6169_p0 = pmov %p6167_p3 }
 0x105   : > { %5322 = vsyncadd (%p6168_p9), [#allocation12], 4294966768 }
 0x106   : > { %5324 = dma.done.wait (%p6169_p0), [#allocation15], 1024   ;;  %p6170_p8 = pmov %p6169_p0 }
 0x108   : > { %5326 = vsyncadd (%p6170_p8), [#allocation15], 4294966272 }
 0x109   : > { %508 = sfence }
 0x10a   : > { %v574_v0 = vld [vmem:[#allocation11] sm:$0xff]  ;;  %v575_v1 = vld [vmem:[#allocation11 + $0x8] sm:$0xff]  ;;  %v576_v2 = vld [vmem:[#allocation11 + $0x10] sm:$0xff]  ;;  %vm585_vm0 = vcmask 261120   ;;  %v5366_v46 = vmov 0.0   ;;  %vm5367_vm1 = vmmov 0  }
 0x10b   : > { %v593_v3 = vand.u32 4294901760, %v574_v0  ;;  %v596_v4 = vand.u32 4294901760, %v575_v1  ;;  %v577_v5 = vld [vmem:[#allocation11 + $0x18] sm:$0xff]  ;;  %v599_v6 = vand.u32 4294901760, %v576_v2  ;;  %v572_v7 = vld [vmem:[%s469_s15] sm:$0xff]  ;;  %4447 = vmatprep.subr.mxu1 %v5366_v46  ;;  %4449 = vmatprep.mubr.msk.f32.mxu1 %vm5367_vm1, %v5366_v46  ;;  %p558_p2 = scmp.lt.s32.totalorder %s5345_s16, 1 }
 0x10c   : > { %v573_v8 = vld [vmem:[%s469_s15 + $0x8] sm:$0xff]  ;;  %v602_v9 = vand.u32 4294901760, %v577_v5  ;;  %v587_v10 = vsel %vm585_vm0, %v572_v7, 0  ;;  %v5806_v47 = vld [vmem:[%s5750_s0] sm:$0xff]  ;;  %s6171_s1 = sld [smem:[#allocation33_spill]]  ;;  %s565_s22 = sld [smem:[#allocation3]] }
 0x10d   : > { %v590_v11 = vsel %vm585_vm0, %v573_v8, 0  ;;  %v5771_v12 = vpack.c.bf16 %v596_v4, %v593_v3  ;;  %v5773_v13 = vand.u32 4294901760, %v587_v10  ;;  %v683_v15 = vsub.f32 %v574_v0, %v593_v3  ;;  %v5809_v48 = vld [vmem:[%s5750_s0 + $0x8] sm:$0xff]  ;;  %v4228_v52 = vld [vmem:[#allocation13] ss:$0 sm:$0xff]  ;;  %s559_s19 = scalar_select %p558_p2, %s5345_s16, 1 }
 0x10e   : > { %v5775_v14 = vand.u32 4294901760, %v590_v11  ;;  %v5777_v16 = vpack.c.bf16 %v602_v9, %v599_v6  ;;  %v690_v17 = vsub.f32 %v575_v1, %v596_v4  ;;  %v697_v18 = vsub.f32 %v576_v2, %v599_v6  ;;  %s4226_s10 = sld [smem:[#allocation3 + $0x1]]  ;;  %s6172_s18 = sld [smem:[#allocation37_spill]] }
 0x10f   : > { %v704_v19 = vsub.f32 %v577_v5, %v602_v9  ;;  %4700 = vmatprep.subr.bf16.mxu0 %v5771_v12  ;;  %v662_v20 = vsub.f32 %v587_v10, %v5773_v13  ;;  %v684_v22 = vand.u32 4294901760, %v683_v15  ;;  %v2055_v49 = vsel %vm585_vm0, %v5806_v47, 0  ;;  %s4225_s21 = sshll.u32 %s559_s19, 3  ;;  %s4227_s27 = sld [smem:[#allocation3 + $0x2]] }
 0x110   : > { %v672_v21 = vsub.f32 %v590_v11, %v5775_v14  ;;  %4702 = vmatpush3.bf16.msra.mxu0 %v5771_v12  ;;  %v691_v23 = vand.u32 4294901760, %v690_v17  ;;  %v698_v24 = vand.u32 4294901760, %v697_v18  ;;  %v4715_v42 = vpack.c.bf16 %v690_v17, %v683_v15  ;;  %s6173_s20 = sld [smem:[#allocation30_spill]]  ;;  %s4234_s11 = sshll.u32 %s5345_s16, 7 }
 0x111   : > { %v705_v25 = vand.u32 4294901760, %v704_v19  ;;  %4704 = vmatprep.subr.bf16.mxu0 %v5777_v16  ;;  %v663_v26 = vand.u32 4294901760, %v662_v20  ;;  %v685_v28 = vsub.f32 %v683_v15, %v684_v22  ;;  %v4719_v43 = vpack.c.bf16 %v704_v19, %v697_v18  ;;  %s557_s8 = scalar_lea.vmem [#allocation17], %s4219_s26  ;;  %s6174_s15 = sld [smem:[#allocation38_spill]] }
 0x112   : > { %v673_v27 = vand.u32 4294901760, %v672_v21  ;;  %v692_v29 = vsub.f32 %v690_v17, %v691_v23  ;;  %v699_v30 = vsub.f32 %v697_v18, %v698_v24  ;;  %v4731_v44 = vpack.c.bf16 %v691_v23, %v684_v22  ;;  %s564_s25 = scalar_lea.vmem %s6171_s1, %s4225_s21  ;;  %v2970_v17 = vld [vmem:[#allocation14 + $0x8] sm:$0xff]  ;;  %v2971_v22 = vld [vmem:[#allocation14 + $0x10] sm:$0xff]  ;;  %v2972_v23 = vld [vmem:[#allocation14 + $0x18] sm:$0xff]  ;;  %s4002_s5 = sshll.u32 %s557_s8, 4  ;;  %s6039_s5 = int_to_ptr.vmem [resolvable:$true] %s4002_s5 }
 0x113   : > { %v706_v31 = vsub.f32 %v704_v19, %v705_v25  ;;  %v664_v32 = vsub.f32 %v662_v20, %v663_v26  ;;  %v686_v34 = vand.u32 4294901760, %v685_v28  ;;  %v4735_v45 = vpack.c.bf16 %v705_v25, %v698_v24  ;;  %v2968_v18 = vld [vmem:[%s564_s25] sm:$0xff]  ;;  %s3988_s0 = scalar_lea.sflag [#allocation5], %s5741_s13  ;;  %s5255_s16 = scalar_lea.vmem %s6039_s5, 128 }
 0x114   : > { %v674_v33 = vsub.f32 %v672_v21, %v673_v27  ;;  %4706 = vmatpush3.bf16.msra.mxu0 %v5777_v16  ;;  %v693_v35 = vand.u32 4294901760, %v692_v29  ;;  %v700_v36 = vand.u32 4294901760, %v699_v30  ;;  %v1140_v50 = vsel %vm585_vm0, %v5809_v48, 0  ;;  %p5256_p1 = scmp.ne.s32.totalorder %s6039_s5, %s5255_s16  ;;  %s5369_s26 = smov [#allocation17]  }
 0x115   : > { %v707_v37 = vand.u32 4294901760, %v706_v31  ;;  %v665_v38 = vand.u32 4294901760, %v664_v32  ;;  %v5815_v51 = vand.u32 4294901760, %v2055_v49  ;;  %v5817_v53 = vand.u32 4294901760, %v1140_v50 }
 0x116   : > { %v675_v39 = vand.u32 4294901760, %v674_v33  ;;  %v4707_v40 = vpack.c.bf16 %v693_v35, %v686_v34  ;;  %v2993_v28 = vand.u32 4294901760, %v2972_v23  ;;  %v5368_v34 = vmov 0.0|0.0   ;;  %p6176_p6 = scmp.ne.s32.totalorder %s6173_s20, 0 }
 0x117   : > { %v4711_v41 = vpack.c.bf16 %v707_v37, %v700_v36  ;;  %4389 = vmatprep.mubr.f32.mxu0 %v665_v38  ;;  %v2127_v57 = vsub.f32 %v2055_v49, %v5815_v51  ;;  %v1212_v59 = vsub.f32 %v1140_v50, %v5817_v53  ;;  %vm1593_vm2 = vcmask 64512   ;;  %s6175_s7 = smov %s6174_s15  ;;  %s6037_s23 = scalar_lea.hbm %s6174_s15, %s4234_s11 }
 0x118   : > { %4390 = vmatmul.mubr.f32.vlgmr.msra.gmra.mrb[0].mxu0 %v675_v39  ;;  %4708 = vmatprep.subr.bf16.mxu0 %v4707_v40  ;;  %v3085_v31 = vsub.f32 %v2972_v23, %v2993_v28  ;;  %p5257_p7 = pnand %p5256_p1, %p6176_p6 }
 0x119   : > { %4710 = vmatpush3.bf16.msra.mxu0 %v4707_v40  ;;  %4400 = vmatprep.mubr.f32.mxu0 %v5773_v13  ;;  %v2128_v60 = vand.u32 4294901760, %v2127_v57  ;;  %v1213_v61 = vand.u32 4294901760, %v1212_v59 }
 0x11a   : > { %4712 = vmatprep.subr.bf16.mxu0 %v4711_v41  ;;  %v3086_v40 = vand.u32 4294901760, %v3085_v31  ;;  %p5258_p11 = pneg %p5257_p7 }
 0x11b   : > { %v2129_v62 = vsub.f32 %v2127_v57, %v2128_v60  ;;  %v1214_v0 = vsub.f32 %v1212_v59, %v1213_v61 }
 0x11c   : > { %v3087_v49 = vsub.f32 %v3085_v31, %v3086_v40 }
 0x11d   : > { %4714 = vmatpush3.bf16.msra.mxu0 %v4711_v41  ;;  %v2130_v6 = vand.u32 4294901760, %v2129_v62  ;;  %v1215_v8 = vand.u32 4294901760, %v1214_v0 }
 0x11e   : > { %4716 = vmatprep.subr.bf16.mxu0 %v4715_v42 }
 0x120   : > { %4401 = vmatmul.mubr.f32.vlgmr.msra.gmra.mrb[0].mxu0 %v5775_v14 }
 0x121   : > { %4718 = vmatpush3.bf16.msra.mxu0 %v4715_v42  ;;  %4411 = vmatprep.mubr.f32.mxu0 %v662_v20  ;;  %v2987_v20 = vand.u32 4294901760, %v2970_v17 }
 0x122   : > { %4720 = vmatprep.subr.bf16.mxu0 %v4719_v43 }
 0x125   : > { %4722 = vmatpush3.bf16.msra.mxu0 %v4719_v43 }
 0x126   : > { %4724 = vmatprep.subr.bf16.mxu0 %v5771_v12 }
 0x128   : > { %4412 = vmatmul.mubr.f32.vlgmr.msra.gmra.mrb[0].mxu0 %v672_v21  ;;  %v2981_v21 = vsel %vm585_vm0, %v2968_v18, 0 }
 0x129   : > { %4726 = vmatpush3.bf16.msra.mxu0 %v5771_v12  ;;  %4422 = vmatprep.mubr.f32.mxu0 %v663_v26  ;;  %v5875_v24 = vand.u32 4294901760, %v2981_v21  ;;  %v3071_v26 = vsub.f32 %v2970_v17, %v2987_v20 }
 0x12a   : > { %4728 = vmatprep.subr.bf16.mxu0 %v5777_v16 }
 0x12b   : > { %v3053_v29 = vsub.f32 %v2981_v21, %v5875_v24  ;;  %v3072_v33 = vand.u32 4294901760, %v3071_v26 }
 0x12d   : > { %4730 = vmatpush3.bf16.msra.mxu0 %v5777_v16  ;;  %v3054_v36 = vand.u32 4294901760, %v3053_v29  ;;  %v3073_v38 = vsub.f32 %v3071_v26, %v3072_v33 }
 0x12e   : > { %4732 = vmatprep.subr.bf16.mxu0 %v4731_v44 }
 0x12f   : > { %v3055_v42 = vsub.f32 %v3053_v29, %v3054_v36 }
 0x130   : > { %4423 = vmatmul.mubr.f32.vlgmr.msra.gmra.mrb[0].mxu0 %v673_v27  ;;  %v2990_v27 = vand.u32 4294901760, %v2971_v22 }
 0x131   : > { %4734 = vmatpush3.bf16.msra.mxu0 %v4731_v44  ;;  %4433 = vmatprep.mubr.f32.mxu0 %v5773_v13  ;;  %v3074_v44 = vand.u32 4294901760, %v3073_v38  ;;  %v3056_v50 = vand.u32 4294901760, %v3055_v42  ;;  %v2523_v42 = vand.u32 4294901760, %v5809_v48 }
 0x132   : > { %4736 = vmatprep.subr.bf16.mxu0 %v4735_v45  ;;  %v3078_v30 = vsub.f32 %v2971_v22, %v2990_v27  ;;  %v4751_v41 = vpack.c.bf16 %v2993_v28, %v2990_v27 }
 0x134   : > { %v3079_v39 = vand.u32 4294901760, %v3078_v30 }
 0x135   : > { %4738 = vmatpush3.bf16.msra.mxu0 %v4735_v45 }
 0x136   : > { %4740 = vmatprep.subr.bf16.mxu0 %v5771_v12  ;;  %v3080_v45 = vsub.f32 %v3078_v30, %v3079_v39 }
 0x138   : > { %4434 = vmatmul.mubr.f32.vlgmr.msra.gmra.mrb[0].mxu0 %v5775_v14 }
 0x139   : > { %4742 = vmatpush3.bf16.msra.mxu0 %v5771_v12  ;;  %4444 = vmatprep.mubr.f32.mxu0 %v5773_v13 }
 0x13a   : > { %4744 = vmatprep.subr.bf16.mxu0 %v5777_v16 }
 0x13d   : > { %4746 = vmatpush3.bf16.msra.mxu0 %v5777_v16  ;;  %v2969_v16 = vld [vmem:[#allocation14] sm:$0xff] }
 0x13e   : > { %4507 = vmatprep.subr.mxu0 %v5366_v46  ;;  %v2984_v19 = vand.u32 4294901760, %v2969_v16 }
 0x140   : > { %4445 = vmatmul.mubr.f32.vlgmr.msra.gmra.mrb[0].mxu0 %v5775_v14  ;;  %v5877_v25 = vsub.f32 %v2969_v16, %v2984_v19  ;;  %v4748_v35 = vpack.c.bf16 %v2987_v20, %v2984_v19 }
 0x141   : > { %4509 = vmatprep.mubr.msk.f32.mxu0 %vm5367_vm1, %v5366_v46 }
 0x142   : > { %v3065_v32 = vand.u32 4294901760, %v5877_v25 }
 0x144   : > { %v3066_v37 = vsub.f32 %v5877_v25, %v3065_v32 }
 0x146   : > { %v3067_v43 = vand.u32 4294901760, %v3066_v37 }
 0x213   : > { %v4446_v54 = vpop.f32.mrb[0].mxu0 }
 0x214   : > { %v4819_v55 = vadd.f32 %v4446_v54, %v4228_v52  ;;  %v1110_v56 = vpop.f32.mrb[1].mxu0  ;;  %v3088_v54 = vand.u32 4294901760, %v3087_v49 }
 0x215   : > { %v4820_v58 = vadd.f32 %v4228_v52, %v1110_v56  ;;  %v3081_v52 = vand.u32 4294901760, %v3080_v45  ;;  %v4763_v56 = vpack.c.bf16 %v3085_v31, %v3078_v30 }
 0x216   : > { %1121 = vst.msk [vmem:[#allocation2 + $0x8] sm:$0xff] %vm585_vm0, %v4819_v55  ;;  %v4760_v55 = vpack.c.bf16 %v3071_v26, %v5877_v25 }
 0x217   : > { %1120 = vst.msk [vmem:[#allocation2] sm:$0xff] %vm585_vm0, %v4820_v58  ;;  %v4775_v58 = vpack.c.bf16 %v3086_v40, %v3079_v39 }
 0x21d   : > { %v5823_v63 = vld [vmem:[#allocation2 + $0x8] sm:$0xff] }
 0x21e   : > { %v2058_v1 = vsel %vm585_vm0, %v5823_v63, 0  ;;  %v5827_v2 = vld [vmem:[#allocation2] sm:$0xff] }
 0x21f   : > { %v5829_v3 = vand.u32 4294901760, %v2058_v1  ;;  %v1143_v4 = vsel %vm585_vm0, %v5827_v2, 0 }
 0x220   : > { %v5833_v5 = vand.u32 4294901760, %v1143_v4 }
 0x221   : > { %4508 = vmatpush3.xpose.msra.mxu0 %v5829_v3  ;;  %v2138_v7 = vsub.f32 %v2058_v1, %v5829_v3 }
 0x222   : > { %4448 = vmatpush3.xpose.msra.mxu1 %v5833_v5  ;;  %v1223_v9 = vsub.f32 %v1143_v4, %v5833_v5  ;;  %4512 = vmatprep.subr.mxu0 %v5366_v46 }
 0x223   : > { %4452 = vmatprep.subr.mxu1 %v5366_v46  ;;  %v2139_v10 = vand.u32 4294901760, %v2138_v7 }
 0x224   : > { %4510 = vmatmul.mubr.f32.vlgmr.msra.gmra.mrb[2].mxu0 %v2130_v6  ;;  %v1224_v11 = vand.u32 4294901760, %v1223_v9 }
 0x225   : > { %4450 = vmatmul.mubr.f32.vlgmr.msra.gmra.mrb[0].mxu1 %v1215_v8  ;;  %v2140_v12 = vsub.f32 %v2138_v7, %v2139_v10  ;;  %4514 = vmatprep.mubr.msk.f32.mxu0 %vm5367_vm1, %v5366_v46 }
 0x226   : > { %v1225_v13 = vsub.f32 %v1223_v9, %v1224_v11  ;;  %4454 = vmatprep.mubr.msk.f32.mxu1 %vm5367_vm1, %v5366_v46 }
 0x227   : > { %v2141_v14 = vand.u32 4294901760, %v2140_v12 }
 0x228   : > { %v1226_v15 = vand.u32 4294901760, %v1225_v13 }
 0x229   : > { %4513 = vmatpush3.xpose.msra.mxu0 %v2141_v14 }
 0x22a   : > { %4453 = vmatpush3.xpose.msra.mxu1 %v1226_v15  ;;  %4517 = vmatprep.subr.mxu0 %v5366_v46 }
 0x22b   : > { %4457 = vmatprep.subr.mxu1 %v5366_v46 }
 0x22c   : > { %4515 = vmatmul.mubr.f32.vlgmr.msra.gmra.mrb[2].mxu0 %v5815_v51 }
 0x22d   : > { %4455 = vmatmul.mubr.f32.vlgmr.msra.gmra.mrb[0].mxu1 %v5817_v53  ;;  %4518 = vmatpush3.xpose.msra.mxu0 %v2138_v7  ;;  %v4232_v7 = vld [vmem:[%s6172_s18] ss:$0 sm:$0xff] }
 0x22e   : > { %4458 = vmatpush3.xpose.msra.mxu1 %v1223_v9  ;;  %4519 = vmatprep.mubr.msk.f32.mxu0 %vm5367_vm1, %v5366_v46 }
 0x22f   : > { %4522 = vmatprep.subr.mxu0 %v5366_v46  ;;  %4459 = vmatprep.mubr.msk.f32.mxu1 %vm5367_vm1, %v5366_v46 }
 0x230   : > { %4462 = vmatprep.subr.mxu1 %v5366_v46 }
 0x234   : > { %4520 = vmatmul.mubr.f32.vlgmr.msra.gmra.mrb[2].mxu0 %v2127_v57  ;;  %v4772_v57 = vpack.c.bf16 %v3072_v33, %v3065_v32 }
 0x235   : > { %4523 = vmatpush3.xpose.msra.mxu0 %v5829_v3  ;;  %4460 = vmatmul.mubr.f32.vlgmr.msra.gmra.mrb[0].mxu1 %v1212_v59  ;;  %v1591_v59 = vstv %s565_s22 }
 0x236   : > { %4463 = vmatpush3.xpose.msra.mxu1 %v5833_v5  ;;  %4524 = vmatprep.mubr.msk.f32.mxu0 %vm5367_vm1, %v5366_v46 }
 0x237   : > { %4527 = vmatprep.subr.mxu0 %v5366_v46  ;;  %4464 = vmatprep.mubr.msk.f32.mxu1 %vm5367_vm1, %v5366_v46 }
 0x238   : > { %4467 = vmatprep.subr.mxu1 %v5366_v46 }
 0x23c   : > { %4525 = vmatmul.mubr.f32.vlgmr.msra.gmra.mrb[2].mxu0 %v2128_v60  ;;  %v2506_v60 = vstv %s4226_s10 }
 0x23d   : > { %4528 = vmatpush3.xpose.msra.mxu0 %v2139_v10  ;;  %4465 = vmatmul.mubr.f32.vlgmr.msra.gmra.mrb[0].mxu1 %v1213_v61 }
 0x23e   : > { %4468 = vmatpush3.xpose.msra.mxu1 %v1224_v11  ;;  %4529 = vmatprep.mubr.msk.f32.mxu0 %vm5367_vm1, %v5366_v46 }
 0x23f   : > { %4532 = vmatprep.subr.mxu0 %v5366_v46  ;;  %4469 = vmatprep.mubr.msk.f32.mxu1 %vm5367_vm1, %v5366_v46 }
 0x240   : > { %4472 = vmatprep.subr.mxu1 %v5366_v46 }
 0x244   : > { %4530 = vmatmul.mubr.f32.vlgmr.msra.gmra.mrb[2].mxu0 %v5815_v51 }
 0x245   : > { %4533 = vmatpush3.xpose.msra.mxu0 %v5829_v3  ;;  %4470 = vmatmul.mubr.f32.vlgmr.msra.gmra.mrb[0].mxu1 %v5817_v53 }
 0x246   : > { %4473 = vmatpush3.xpose.msra.mxu1 %v5833_v5  ;;  %4534 = vmatprep.mubr.msk.f32.mxu0 %vm5367_vm1, %v5366_v46 }
 0x247   : > { %4747 = vmatprep.subr.bf16.mxu0 %v5368_v34  ;;  %4474 = vmatprep.mubr.msk.f32.mxu1 %vm5367_vm1, %v5366_v46 }
 0x248   : > { %4477 = vmatprep.subr.mxu1 %v5366_v46 }
 0x24c   : > { %4535 = vmatmul.mubr.f32.vlgmr.msra.gmra.mrb[2].mxu0 %v5815_v51  ;;  %v4754_v51 = vpack.c.bf16 %v3074_v44, %v3067_v43  ;;  %v2600_v44 = vsub.f32 %v5809_v48, %v2523_v42 }
 0x24d   : > { %4749 = vmatpush3.bf16.msra.mxu0 %v4748_v35  ;;  %4475 = vmatmul.mubr.f32.vlgmr.msra.gmra.mrb[0].mxu1 %v5817_v53  ;;  %v4757_v53 = vpack.c.bf16 %v3088_v54, %v3081_v52 }
 0x24e   : > { %4750 = vmatprep.subr.bf16.mxu0 %v5368_v34  ;;  %4575 = vmatprep.mubr.msk.f32.mxu0 %vm5367_vm1, %v5366_v46  ;;  %v2601_v49 = vand.u32 4294901760, %v2600_v44 }
 0x24f   : > { %4479 = vmatprep.mubr.msk.f32.mxu1 %vm5367_vm1, %v5366_v46 }
 0x251   : > { %4752 = vmatpush3.bf16.msra.mxu0 %v4751_v41 }
 0x252   : > { %4753 = vmatprep.subr.bf16.mxu0 %v5368_v34 }
 0x254   : > { %4576 = vmatmul.mubr.f32.vlgmr.msra.gmra.mrb[4].mxu0 %v3056_v50 }
 0x255   : > { %4755 = vmatpush3.bf16.msra.mxu0 %v4754_v51  ;;  %4586 = vmatprep.mubr.msk.f32.mxu0 %vm5367_vm1, %v5366_v46  ;;  %v2602_v51 = vsub.f32 %v2600_v44, %v2601_v49 }
 0x256   : > { %4756 = vmatprep.subr.bf16.mxu0 %v5368_v34 }
 0x257   : > { %v2603_v54 = vand.u32 4294901760, %v2602_v51 }
 0x259   : > { %4758 = vmatpush3.bf16.msra.mxu0 %v4757_v53 }
 0x25a   : > { %4759 = vmatprep.subr.bf16.mxu0 %v5368_v34 }
 0x25c   : > { %4587 = vmatmul.mubr.f32.vlgmr.msra.gmra.mrb[4].mxu0 %v5875_v24 }
 0x25d   : > { %4761 = vmatpush3.bf16.msra.mxu0 %v4760_v55  ;;  %4597 = vmatprep.mubr.msk.f32.mxu0 %vm5367_vm1, %v5366_v46  ;;  %v3493_v55 = vld [vmem:[#allocation16] sm:$0xff] }
 0x25e   : > { %4762 = vmatprep.subr.bf16.mxu0 %v5368_v34 }
 0x261   : > { %4764 = vmatpush3.bf16.msra.mxu0 %v4763_v56  ;;  %v3494_v56 = vld [vmem:[#allocation16 + $0x8] sm:$0xff] }
 0x262   : > { %4765 = vmatprep.subr.bf16.mxu0 %v5368_v34 }
 0x264   : > { %4598 = vmatmul.mubr.f32.vlgmr.msra.gmra.mrb[4].mxu0 %v3053_v29 }
 0x265   : > { %4767 = vmatpush3.bf16.msra.mxu0 %v4748_v35  ;;  %4608 = vmatprep.mubr.msk.f32.mxu0 %vm5367_vm1, %v5366_v46 }
 0x266   : > { %4768 = vmatprep.subr.bf16.mxu0 %v5368_v34 }
 0x269   : > { %4770 = vmatpush3.bf16.msra.mxu0 %v4751_v41 }
 0x26a   : > { %4771 = vmatprep.subr.bf16.mxu0 %v5368_v34 }
 0x26c   : > { %4609 = vmatmul.mubr.f32.vlgmr.msra.gmra.mrb[4].mxu0 %v3054_v36 }
 0x26d   : > { %4773 = vmatpush3.bf16.msra.mxu0 %v4772_v57  ;;  %4619 = vmatprep.mubr.msk.f32.mxu0 %vm5367_vm1, %v5366_v46  ;;  %v3502_v57 = vand.u32 4294901760, %v3493_v55 }
 0x26e   : > { %4774 = vmatprep.subr.bf16.mxu0 %v5368_v34 }
 0x271   : > { %4776 = vmatpush3.bf16.msra.mxu0 %v4775_v58  ;;  %v3505_v58 = vand.u32 4294901760, %v3494_v56 }
 0x272   : > { %4777 = vmatprep.subr.bf16.mxu0 %v5368_v34 }
 0x274   : > { %4620 = vmatmul.mubr.f32.vlgmr.msra.gmra.mrb[4].mxu0 %v5875_v24 }
 0x275   : > { %4779 = vmatpush3.bf16.msra.mxu0 %v4748_v35  ;;  %4630 = vmatprep.mubr.msk.f32.mxu0 %vm5367_vm1, %v5366_v46 }
 0x276   : > { %4780 = vmatprep.subr.bf16.mxu0 %v5368_v34 }
 0x279   : > { %4782 = vmatpush3.bf16.msra.mxu0 %v4751_v41 }
 0x27c   : > { %4631 = vmatmul.mubr.f32.vlgmr.msra.gmra.mrb[4].mxu0 %v5875_v24  ;;  %v1609_v24 = vand.u32 4294901760, %v5806_v47 }
 0x27e   : > { %4478 = vmatpush3.msra.mxu1 %v1609_v24  ;;  %v1686_v26 = vsub.f32 %v5806_v47, %v1609_v24 }
 0x27f   : > { %4482 = vmatprep.subr.mxu1 %v5366_v46 }
 0x280   : > { %v1687_v30 = vand.u32 4294901760, %v1686_v26 }
 0x282   : > { %v1688_v32 = vsub.f32 %v1686_v26, %v1687_v30 }
 0x284   : > { %v1689_v36 = vand.u32 4294901760, %v1688_v32 }
 0x31f   : > { %v2502_v61 = vpop.f32.mrb[2].mxu0 }
 0x320   : > { %v1587_v62 = vpop.f32.mrb[0].mxu1  ;;  %v4536_v0 = vpop.f32.mrb[3].mxu0  ;;  %v2507_v4 = vmul.f32 %v2506_v60, %v2502_v61  ;;  %v5978_v60 = vsub.f32 %v3493_v55, %v3502_v57  ;;  %v5980_v61 = vsub.f32 %v3494_v56, %v3505_v58 }
 0x321   : > { %v1592_v1 = vmul.f32 %v1591_v59, %v1587_v62  ;;  %v4476_v3 = vpop.f32.mrb[1].mxu1  ;;  %v5976_v59 = vpack.c.bf16 %v3505_v58, %v3502_v57  ;;  %v3495_v62 = vld [vmem:[#allocation16 + $0x10] sm:$0xff]  ;;  %v3496_v0 = vld [vmem:[#allocation16 + $0x18] sm:$0xff] }
 0x322   : > { %v2508_v6 = vsel %vm1593_vm2, %v2507_v4, -inf  ;;  %v3511_v3 = vand.u32 4294901760, %v3496_v0 }
 0x323   : > { %v1594_v5 = vsel %vm1593_vm2, %v1592_v1, -inf }
 0x324   : > { %1595 = vmax.xlane.f32.xlu0 %v1594_v5  ;;  %v3590_v5 = vand.u32 4294901760, %v5980_v61 }
 0x328   : > { %2509 = vmax.xlane.f32.xlu0 %v2508_v6 }
 0x34f   : > { %v3464_v8 = vpop.f32.mrb[4].mxu0 }
 0x350   : > { %v4823_v9 = vadd.f32 %v4232_v7, %v3464_v8  ;;  %v4632_v10 = vpop.f32.mrb[5].mxu0  ;;  %v5990_v8 = vsub.f32 %v3496_v0, %v3511_v3 }
 0x351   : > { %v3591_v10 = vsub.f32 %v5980_v61, %v3590_v5 }
 0x352   : > { %v3468_v11 = vmul.f32 %v4823_v9, %v5827_v2  ;;  %v3474_v2 = vmul.f32 %v4823_v9, %v5823_v63 }
 0x354   : > { %v3469_v12 = vsel %vm585_vm0, %v3468_v11, 0.0  ;;  %v3475_v23 = vsel %vm585_vm0, %v3474_v2, 0.0 }
 0x355   : > { %3470 = vadd.xlane.f32.xlu0 %v3469_v12  ;;  %v3592_v12 = vand.u32 4294901760, %v3591_v10 }
 0x3b1   : > { %v1596_v13 = vpop.xlane.xlu0 %1595 }
 0x3b2   : > { %v1597_v14 = vsub.f32 %v1592_v1, %v1596_v13  ;;  %v3508_v1 = vand.u32 4294901760, %v3495_v62 }
 0x3b4   : > { %v1598_v15 = vmul.f32 1.442695, %v1597_v14  ;;  %v5986_v6 = vpack.c.bf16 %v3511_v3, %v3508_v1  ;;  %v5988_v7 = vsub.f32 %v3495_v62, %v3508_v1  ;;  %v3604_v14 = vand.u32 4294901760, %v5990_v8 }
 0x3b5   : > { %v2510_v16 = vpop.xlane.xlu0 %2509 }
 0x3b6   : > { %5024 = vpow2.f32 %v1598_v15  ;;  %v2511_v17 = vsub.f32 %v2507_v4, %v2510_v16  ;;  %v3583_v4 = vand.u32 4294901760, %v5978_v60  ;;  %v3597_v13 = vand.u32 4294901760, %v5988_v7 }
 0x3b8   : > { %v2512_v18 = vmul.f32 1.442695, %v2511_v17  ;;  %v3584_v9 = vsub.f32 %v5978_v60, %v3583_v4  ;;  %v3598_v16 = vsub.f32 %v5988_v7, %v3597_v13  ;;  %v3605_v17 = vsub.f32 %v5990_v8, %v3604_v14 }
 0x3b9   : > { %v4808_v2 = vpack.c.bf16 %v3590_v5, %v3583_v4 }
 0x3ba   : > { %5026 = vpow2.f32 %v2512_v18  ;;  %v3585_v11 = vand.u32 4294901760, %v3584_v9  ;;  %v3599_v18 = vand.u32 4294901760, %v3598_v16 }
 0x3bc   : > { %v4790_v15 = vpack.c.bf16 %v3592_v12, %v3585_v11 }
 0x3c0   : > { %v5025_v19 = vpop.eup %5024 }
 0x3c1   : > { %v1600_v20 = vsel %vm1593_vm2, %v5025_v19, 0.0 }
 0x3c2   : > { %1601 = vadd.xlane.f32.xlu1 %v1600_v20 }
 0x3c4   : > { %v5027_v21 = vpop.eup %5026 }
 0x3c5   : > { %v2514_v22 = vsel %vm1593_vm2, %v5027_v21, 0.0 }
 0x3c6   : > { %2515 = vadd.xlane.f32.xlu1 %v2514_v22  ;;  %v4799_v22 = vpack.c.bf16 %v5990_v8, %v5988_v7 }
 0x3ca   : > { %3476 = vadd.xlane.f32.xlu1 %v3475_v23  ;;  %v4811_v23 = vpack.c.bf16 %v3604_v14, %v3597_v13 }
 0x44f   : > { %v1602_v25 = vpop.xlane.xlu1 %1601 }
 0x450   : > { %5028 = vrcp.f32 %v1602_v25  ;;  %v3472_v25 = vstv %s4227_s27 }
 0x453   : > { %v2516_v38 = vpop.xlane.xlu1 %2515 }
 0x454   : > { %5030 = vrcp.f32 %v2516_v38 }
 0x45a   : > { %v5029_v27 = vpop.eup %5028 }
 0x45b   : > { %v1604_v28 = vmul.f32 %v5029_v27, %v5025_v19  ;;  %v3606_v19 = vand.u32 4294901760, %v3605_v17 }
 0x45d   : > { %v1606_v29 = vsel %vm1593_vm2, %v1604_v28, 0  ;;  %v4793_v20 = vpack.c.bf16 %v3606_v19, %v3599_v18 }
 0x45e   : > { %v1674_v31 = vand.u32 4294901760, %v1606_v29  ;;  %v5031_v39 = vpop.eup %5030 }
 0x45f   : > { %v2518_v40 = vmul.f32 %v5031_v39, %v5027_v21  ;;  %v4796_v21 = vpack.c.bf16 %v5980_v61, %v5978_v60 }
 0x460   : > { %v1675_v63 = vsub.f32 %v1606_v29, %v1674_v31 }
 0x461   : > { %v2520_v41 = vsel %vm1593_vm2, %v2518_v40, 0 }
 0x462   : > { %v1676_v33 = vand.u32 4294901760, %v1675_v63  ;;  %v2588_v43 = vand.u32 4294901760, %v2520_v41 }
 0x464   : > { %v1677_v35 = vsub.f32 %v1675_v63, %v1676_v33  ;;  %v2589_v45 = vsub.f32 %v2520_v41, %v2588_v43 }
 0x466   : > { %v1678_v37 = vand.u32 4294901760, %v1677_v35  ;;  %v2590_v50 = vand.u32 4294901760, %v2589_v45 }
 0x468   : > { %4480 = vmatmul.mubr.f32.vlgmr.msra.gmra.mrb[2].mxu1 %v1678_v37  ;;  %v2591_v52 = vsub.f32 %v2589_v45, %v2590_v50 }
 0x469   : > { %4483 = vmatpush3.msra.mxu1 %v1689_v36  ;;  %4484 = vmatprep.mubr.msk.f32.mxu1 %vm5367_vm1, %v5366_v46 }
 0x46a   : > { %4487 = vmatprep.subr.mxu1 %v5366_v46  ;;  %v2592_v53 = vand.u32 4294901760, %v2591_v52 }
 0x470   : > { %4485 = vmatmul.mubr.f32.vlgmr.msra.gmra.mrb[2].mxu1 %v1674_v31 }
 0x471   : > { %4488 = vmatpush3.msra.mxu1 %v1686_v26  ;;  %4489 = vmatprep.mubr.msk.f32.mxu1 %vm5367_vm1, %v5366_v46  ;;  %v3471_v26 = vpop.xlane.xlu0 %3470 }
 0x472   : > { %4492 = vmatprep.subr.mxu1 %v5366_v46  ;;  %v3473_v28 = vmul.f32 %v3472_v25, %v3471_v26 }
 0x478   : > { %4490 = vmatmul.mubr.f32.vlgmr.msra.gmra.mrb[2].mxu1 %v1675_v63 }
 0x479   : > { %4493 = vmatpush3.msra.mxu1 %v1609_v24  ;;  %4494 = vmatprep.mubr.msk.f32.mxu1 %vm5367_vm1, %v5366_v46 }
 0x47a   : > { %4497 = vmatprep.subr.mxu1 %v5366_v46 }
 0x480   : > { %4495 = vmatmul.mubr.f32.vlgmr.msra.gmra.mrb[2].mxu1 %v1676_v33 }
 0x481   : > { %4498 = vmatpush3.msra.mxu1 %v1687_v30  ;;  %4499 = vmatprep.mubr.msk.f32.mxu1 %vm5367_vm1, %v5366_v46 }
 0x482   : > { %4502 = vmatprep.subr.mxu1 %v5366_v46 }
 0x488   : > { %4500 = vmatmul.mubr.f32.vlgmr.msra.gmra.mrb[2].mxu1 %v1674_v31 }
 0x489   : > { %4503 = vmatpush3.msra.mxu1 %v1609_v24  ;;  %4504 = vmatprep.mubr.msk.f32.mxu1 %vm5367_vm1, %v5366_v46  ;;  %v3477_v24 = vpop.xlane.xlu1 %3476 }
 0x48a   : > { %4537 = vmatprep.subr.mxu1 %v5366_v46  ;;  %v3478_v27 = vmul.f32 %v3477_v24, %v3472_v25 }
 0x490   : > { %4505 = vmatmul.mubr.f32.vlgmr.msra.gmra.mrb[2].mxu1 %v1674_v31  ;;  %v3479_v31 = vmax.f32 %v3473_v28, %v3478_v27 }
 0x491   : > { %4538 = vmatpush3.msra.mxu1 %v2523_v42  ;;  %4539 = vmatprep.mubr.msk.f32.mxu1 %vm5367_vm1, %v5366_v46 }
 0x492   : > { %4542 = vmatprep.subr.mxu1 %v5366_v46  ;;  %v3480_v63 = vsub.f32 %v3473_v28, %v3479_v31  ;;  %v3483_v32 = vsub.f32 %v3478_v27, %v3479_v31 }
 0x494   : > { %4540 = vmatmul.mubr.f32.vlgmr.msra.gmra.mrb[4].mxu1 %v2592_v53  ;;  %v3481_v33 = vmul.f32 1.442695, %v3480_v63  ;;  %v3484_v35 = vmul.f32 1.442695, %v3483_v32 }
 0x495   : > { %4543 = vmatpush3.msra.mxu1 %v2603_v54  ;;  %4544 = vmatprep.mubr.msk.f32.mxu1 %vm5367_vm1, %v5366_v46 }
 0x496   : > { %4547 = vmatprep.subr.mxu1 %v5366_v46  ;;  %5032 = vpow2.f32 %v3481_v33 }
 0x497   : > { %5034 = vpow2.f32 %v3484_v35 }
 0x49c   : > { %4545 = vmatmul.mubr.f32.vlgmr.msra.gmra.mrb[4].mxu1 %v2588_v43 }
 0x49d   : > { %4548 = vmatpush3.msra.mxu1 %v2600_v44  ;;  %4549 = vmatprep.mubr.msk.f32.mxu1 %vm5367_vm1, %v5366_v46 }
 0x49e   : > { %4552 = vmatprep.subr.mxu1 %v5366_v46 }
 0x4a0   : > { %v5033_v36 = vpop.eup %5032 }
 0x4a1   : > { %v5035_v37 = vpop.eup %5034 }
 0x4a2   : > { %v3486_v38 = vadd.f32 %v5035_v37, %v5033_v36 }
 0x4a4   : > { %4550 = vmatmul.mubr.f32.vlgmr.msra.gmra.mrb[4].mxu1 %v2589_v45  ;;  %5036 = vrcp.f32 %v3486_v38 }
 0x4a5   : > { %4553 = vmatpush3.msra.mxu1 %v2523_v42  ;;  %4554 = vmatprep.mubr.msk.f32.mxu1 %vm5367_vm1, %v5366_v46 }
 0x4a6   : > { %4557 = vmatprep.subr.mxu1 %v5366_v46 }
 0x4ac   : > { %4555 = vmatmul.mubr.f32.vlgmr.msra.gmra.mrb[4].mxu1 %v2590_v50 }
 0x4ad   : > { %4558 = vmatpush3.msra.mxu1 %v2601_v49  ;;  %4559 = vmatprep.mubr.msk.f32.mxu1 %vm5367_vm1, %v5366_v46 }
 0x4ae   : > { %4562 = vmatprep.subr.mxu1 %v5366_v46  ;;  %v5037_v39 = vpop.eup %5036 }
 0x4af   : > { %v3488_v44 = vmul.f32 %v5037_v39, %v5033_v36 }
 0x4b4   : > { %4560 = vmatmul.mubr.f32.vlgmr.msra.gmra.mrb[4].mxu1 %v2588_v43 }
 0x4b5   : > { %4563 = vmatpush3.msra.mxu1 %v2523_v42  ;;  %4564 = vmatprep.mubr.msk.f32.mxu1 %vm5367_vm1, %v5366_v46  ;;  %v3489_v42 = vmul.f32 %v5037_v39, %v5035_v37 }
 0x4b6   : > { %4783 = vmatprep.subr.bf16.mxu1 %v5368_v34 }
 0x4bc   : > { %4565 = vmatmul.mubr.f32.vlgmr.msra.gmra.mrb[4].mxu1 %v2588_v43 }
 0x4bd   : > { %4641 = vmatprep.mubr.msk.f32.mxu1 %vm5367_vm1, %v5366_v46  ;;  %4785 = vmatpush3.bf16.msra.mxu1 %v5976_v59 }
 0x4be   : > { %4786 = vmatprep.subr.bf16.mxu1 %v5368_v34 }
 0x4c1   : > { %4788 = vmatpush3.bf16.msra.mxu1 %v5986_v6 }
 0x4c2   : > { %4789 = vmatprep.subr.bf16.mxu1 %v5368_v34 }
 0x563   : > { %v2050_v29 = vpop.f32.mrb[2].mxu1 }
 0x564   : > { %v4506_v30 = vpop.f32.mrb[3].mxu1  ;;  %v4821_v40 = vadd.f32 %v5809_v48, %v2050_v29 }
 0x566   : > { %v3491_v49 = vmul.f32 %v4821_v40, %v3489_v42 }
 0x58f   : > { %v2964_v41 = vpop.f32.mrb[4].mxu1 }
 0x590   : > { %v4822_v43 = vadd.f32 %v2964_v41, %v5806_v47  ;;  %v4566_v45 = vpop.f32.mrb[5].mxu1  ;;  %v3497_v47 = vld [vmem:[%s5759_s3] sm:$0xff]  ;;  %s5259_s3 = sshll.u32 %s5369_s26, 4  ;;  %s5260_s3 = int_to_ptr.vmem [resolvable:$false] %s5259_s3 }
 0x591   : > { %s5261_s19 = scalar_lea.vmem %s5260_s3, 256  ;;  %p5262_p13 = scmp.lt.s32.totalorder %s6039_s5, %s5260_s3 }
 0x592   : > { %v3490_v50 = vmul.f32 %v4822_v43, %v3488_v44  ;;  %p5263_p4 = scmp.lt.s32.totalorder %s5261_s19, %s5255_s16 }
 0x594   : > { %v3492_v51 = vadd.f32 %v3491_v49, %v3490_v50  ;;  %p5264_p10 = por %p5263_p4, %p5262_p13 }
 0x596   : > { %v3499_v52 = vsel %vm585_vm0, %v3492_v51, 0  ;;  %p5265_p12 = pnand %p5264_p10, %p5258_p11 }
 0x597   : > { %v3570_v54 = vand.u32 4294901760, %v3499_v52 }
 0x599   : > { %v3571_v53 = vsub.f32 %v3499_v52, %v3570_v54 }
 0x59b   : > { %v3572_v55 = vand.u32 4294901760, %v3571_v53 }
 0x59d   : > { %v3573_v56 = vsub.f32 %v3571_v53, %v3572_v55 }
 0x59f   : > { %v3574_v57 = vand.u32 4294901760, %v3573_v56 }
 0x5a1   : > { %4642 = vmatmul.mubr.f32.vlgmr.msra.gmra.mrb[6].mxu1 %v3574_v57 }
 0x5a2   : > { %4791 = vmatpush3.bf16.msra.mxu1 %v4790_v15  ;;  %4652 = vmatprep.mubr.msk.f32.mxu1 %vm5367_vm1, %v5366_v46 }
 0x5a3   : > { %4792 = vmatprep.subr.bf16.mxu1 %v5368_v34 }
 0x5a6   : > { %4794 = vmatpush3.bf16.msra.mxu1 %v4793_v20 }
 0x5a7   : > { %4795 = vmatprep.subr.bf16.mxu1 %v5368_v34 }
 0x5a9   : > { %4653 = vmatmul.mubr.f32.vlgmr.msra.gmra.mrb[6].mxu1 %v3570_v54 }
 0x5aa   : > { %4797 = vmatpush3.bf16.msra.mxu1 %v4796_v21  ;;  %4663 = vmatprep.mubr.msk.f32.mxu1 %vm5367_vm1, %v5366_v46 }
 0x5ab   : > { %4798 = vmatprep.subr.bf16.mxu1 %v5368_v34 }
 0x5ae   : > { %4800 = vmatpush3.bf16.msra.mxu1 %v4799_v22 }
 0x5af   : > { %4801 = vmatprep.subr.bf16.mxu1 %v5368_v34 }
 0x5b1   : > { %4664 = vmatmul.mubr.f32.vlgmr.msra.gmra.mrb[6].mxu1 %v3571_v53 }
 0x5b2   : > { %4803 = vmatpush3.bf16.msra.mxu1 %v5976_v59  ;;  %4674 = vmatprep.mubr.msk.f32.mxu1 %vm5367_vm1, %v5366_v46 }
 0x5b3   : > { %4804 = vmatprep.subr.bf16.mxu1 %v5368_v34 }
 0x5b6   : > { %4806 = vmatpush3.bf16.msra.mxu1 %v5986_v6 }
 0x5b7   : > { %4807 = vmatprep.subr.bf16.mxu1 %v5368_v34 }
 0x5b9   : > { %4675 = vmatmul.mubr.f32.vlgmr.msra.gmra.mrb[6].mxu1 %v3572_v55 }
 0x5ba   : > { %4809 = vmatpush3.bf16.msra.mxu1 %v4808_v2  ;;  %4685 = vmatprep.mubr.msk.f32.mxu1 %vm5367_vm1, %v5366_v46 }
 0x5bb   : > { %4810 = vmatprep.subr.bf16.mxu1 %v5368_v34 }
 0x5be   : > { %4812 = vmatpush3.bf16.msra.mxu1 %v4811_v23 }
 0x5bf   : > { %4813 = vmatprep.subr.bf16.mxu1 %v5368_v34 }
 0x5c1   : > { %4686 = vmatmul.mubr.f32.vlgmr.msra.gmra.mrb[6].mxu1 %v3570_v54 }
 0x5c2   : > { %4815 = vmatpush3.bf16.msra.mxu1 %v5976_v59  ;;  %4696 = vmatprep.mubr.msk.f32.mxu1 %vm5367_vm1, %v5366_v46 }
 0x5c3   : > { %4816 = vmatprep.subr.bf16.mxu1 %v5368_v34 }
 0x5c6   : > { %4818 = vmatpush3.bf16.msra.mxu1 %v5986_v6 }
 0x5c9   : > { %4697 = vmatmul.mubr.f32.vlgmr.msra.gmra.mrb[6].mxu1 %v3570_v54 }
 0x69c   : > { %v3982_v48 = vpop.f32.mrb[6].mxu1 }
 0x69d   : > { %v4824_v58 = vadd.f32 %v3982_v48, %v3497_v47  ;;  %v4698_v60 = vpop.f32.mrb[7].mxu1 }
 0x69f   : > { %3986 = vst.msk [vmem:[%s557_s8] sm:$0xff] %vm585_vm0, %v4824_v58 }
 0x6a0   : > { %5268 = shalt.err (!%p5265_p12)
}
 0x6a1   : > { %s5269_s13 = scalar_lea.hbm %s6037_s23, 128  ;;  %s5273_s30 = scalar_lea.hbm %s6175_s7, 256 }
 0x6a2   : > { %p5270_p5 = scmp.ne.s32.totalorder %s6037_s23, %s5269_s13  ;;  %p5274_p0 = scmp.lt.u32.totalorder %s6037_s23, %s6175_s7 }
 0x6a3   : > { %p5275_p8 = scmp.lt.u32.totalorder %s5273_s30, %s5269_s13  ;;  %p5277_p1 = scmp.lt.u32.totalorder %s5269_s13, %s6037_s23 }
 0x6a4   : > { %p5271_p3 = pnand %p5270_p5, %p6176_p6 }
 0x6a5   : > { %p5276_p2 = por %p5275_p8, %p5274_p0 }
 0x6a6   : > { %p5272_p9 = pneg %p5271_p3 }
 0x6a7   : > { %p5278_p7 = por %p5277_p1, %p5276_p2 }
 0x6a9   : > { %p5279_p11 = pnand %p5278_p7, %p5272_p9 }
 0x6ab   : > { %5282 = shalt.err (!%p5279_p11)
}
 0x6ac   : > { %4921 = dma.vmem_to_hbm [thread:$0]  (%p6176_p6), %s6039_s5, 128, %s6037_s23, %s3988_s0  }
 0x6ad PF: > { %s6177_s22 = sld [smem:[#allocation24_spill]]  ;;  %s6178_s10 = sld [smem:[#allocation28_spill]] }
 0x6ae   : > { %s6179_s28 = sld [smem:[#allocation27_spill]] }
 0x6b3   : > { %s4014_s12 = sand.u32 1, %s6177_s22   ;;  %p6180_p13 = scmp.ne.s32.totalorder %s6178_s10, 0 }
 0x6b4   : > { %p6181_p4 = scmp.ge.s32.totalorder %s6179_s28, 2  ;;  %s4015_s18 = scalar_lea.sflag [#allocation5], %s4014_s12 }
 0x6b6   : > { %p4950_p10 = pnand %p6181_p4, %p6180_p13 }
 0x6b8   : > { %5328 = dma.done.wait (!%p4950_p10), %s4015_s18, 128  }
 0x6b9   : > { %5330 = vsyncadd (!%p4950_p10), %s4015_s18, 4294967168  ;;  %s32_s18 = sadd.s32 1, %s6179_s28   ;;  %s6182_s27 = sld [smem:[#allocation25_spill]] }
 0x6ba   : > { %p29_p12 = scmp.ge.s32.totalorder %s32_s18, 4   ;;  %s6183_s15 = sld [smem:[#allocation31_spill]] }
 0x6bb   : > { %s6184_s16 = sld [smem:[#allocation26_spill]]  ;;  %s6185_s17 = sld [smem:[#allocation29_spill]] }
 0x6bc   : > { %s6186_s13 = smov %s5337_s14  ;;  %31 = sbr.rel (!%p29_p12) target bundleno = 19 (0x13), region = 163 }
 0x6bf   : > { %s6187_s14 = smov %s6182_s27 }
 0x6c3   :  { %4020 = vsyncpa [#allocation4], 1 }
 0x6c4   :  { %4022 = vsyncpa [#allocation4 + $0x1], 1 }
 0x6c5   :  { %4023 = vsyncpa [#allocation9], 1 }
 0x6c6   :  { %4025 = vsyncpa [#allocation9 + $0x1], 1 }
 0x6c7   :  { %4026 = vsyncpa [#allocation12], 1 }
 0x6c8   :  { %4027 = vsyncpa [#allocation15], 1 }
 0x6c9   :  { %4028 = vsyncpa [#allocation5], 1 }
 0x6ca   :  { %4030 = vsyncpa [#allocation5 + $0x1], 1 }
 0x6cb   :  { %4031 = vsyncpa [#allocation6], 1 }
 0x6cc   :  { %4033 = vsyncpa [#allocation6 + $0x1], 1 }

</bundles_post_ra>
